<compile_context>
chip_gen: v6e
topology: v6e:2x2x1
jax: 0.10.0
libtpu: 0.0.40
codegen_flags: <defaults>
</compile_context>

<pallas_src>
import jax
import jax.numpy as jnp
from jax.experimental import pallas as pl
from jax.experimental.pallas import tpu as pltpu

# ---- small config consistent with ModelArgs semantics ----
D_MODEL = 32
D_STATE = 16
EXPAND = 2
D_INNER = EXPAND * D_MODEL                 # 64
DT_RANK = max(1, -(-D_MODEL // 16))        # ceil(d_model / 16) = 2  ('auto')
D_CONV = 4
VOCAB = 104                                # 100 padded up to multiple of 8
VOCAB_PAD = 128                            # lane-dense head width inside kernel
N_LAYER = 1
EPS = 1e-5

B = 2
L = 8

MATMUL_DTYPE = jnp.bfloat16                # MXU-native operand dtype (f32 acc)


def _softplus(z):
    # numerically-stable softplus (explicit form; lowers via EUP exp/log)
    return jnp.maximum(z, 0.0) + jnp.log(1.0 + jnp.exp(-jnp.abs(z)))


def _silu(z):
    # z * sigmoid(z), written without lax.logistic
    return z / (1.0 + jnp.exp(-z))


def _mamba_block(x0, rmsw, w_in, convw, convb, w_xp, bdt, alogT, dvec, wout):
    """One ResidualBlock (RMSNorm -> MambaBlock -> +residual) on an (L, D_MODEL) f32 tile."""
    # RMSNorm
    ms = jnp.mean(x0 * x0, axis=-1, keepdims=True)
    xn = x0 * jax.lax.rsqrt(ms + EPS) * rmsw

    # in_proj: single lane-dense (D_MODEL, 2*D_INNER) = 128-wide matmul, split after.
    xr = jnp.dot(xn.astype(w_in.dtype), w_in, preferred_element_type=jnp.float32)
    xi = xr[:, :D_INNER]                                        # x branch    (L, D_INNER)
    res = xr[:, D_INNER:]                                       # gate branch (L, D_INNER)

    # depthwise causal Conv1d (padding = D_CONV-1, truncated to L):
    #   out[t, d] = bias[d] + sum_k w[k, d] * xi[t - (D_CONV-1-k), d]
    # implemented with XLU sublane rolls + causal mask (no MXU work).
    row = jax.lax.broadcasted_iota(jnp.int32, (L, D_INNER), 0)
    acc = jnp.zeros((L, D_INNER), jnp.float32) + convb
    for k in range(D_CONV):
        shift = D_CONV - 1 - k
        if shift == 0:
            shifted = xi
        else:
            shifted = jnp.where(row >= shift, pltpu.roll(xi, shift, axis=0), 0.0)
        acc = acc + convw[k][None, :] * shifted
    u = _silu(acc)                                              # (L, D_INNER)

    # fused x_proj: [Wxp_dt @ Wdt | Wxp_B | Wxp_C]  -> one (64, 96) MXU pass.
    z = jnp.dot(u.astype(w_xp.dtype), w_xp, preferred_element_type=jnp.float32)
    dt = _softplus(z[:, :D_INNER] + bdt)                        # (L, D_INNER)
    Bm = z[:, D_INNER:D_INNER + D_STATE]                        # (L, D_STATE)
    Cm = z[:, D_INNER + D_STATE:]                               # (L, D_STATE)

    # selective scan; state laid out (D_STATE, D_INNER) = (16, 64),
    # exponentials hoisted out of the serial loop into batched EUP calls.
    A_T = -jnp.exp(alogT)                                       # (D_STATE, D_INNER)
    dA = jnp.exp(dt[:, None, :] * A_T[None, :, :])              # (L, D_STATE, D_INNER)
    dBu = dt[:, None, :] * Bm[:, :, None] * u[:, None, :]       # (L, D_STATE, D_INNER)

    state = jnp.zeros((D_STATE, D_INNER), jnp.float32)
    states = []
    for t in range(L):                                          # unrolled, L static & tiny
        state = dA[t] * state + dBu[t]
        states.append(state)
    st = jnp.stack(states, axis=0)                              # (L, D_STATE, D_INNER)
    y = jnp.sum(st * Cm[:, :, None], axis=1)                    # (L, D_INNER)
    y = y + u * dvec                                            # + D * u
    y = y * _silu(res)                                          # gate with SiLU(res)

    out = jnp.dot(y.astype(wout.dtype), wout, preferred_element_type=jnp.float32)
    return out + x0                                             # residual add


def layer_kernel(x_ref, rmsw_ref, win_ref, convw_ref, convb_ref, wxp_ref,
                 bdt_ref, alogT_ref, dvec_ref, wout_ref, out_ref):
    out_ref[0] = _mamba_block(x_ref[0], rmsw_ref[...], win_ref[...],
                              convw_ref[...], convb_ref[...], wxp_ref[...],
                              bdt_ref[...], alogT_ref[...], dvec_ref[...],
                              wout_ref[...])


def fused_layer_head_kernel(x_ref, rmsw_ref, win_ref, convw_ref, convb_ref,
                            wxp_ref, bdt_ref, alogT_ref, dvec_ref, wout_ref,
                            normw_ref, whead_ref, out_ref):
    h = _mamba_block(x_ref[0], rmsw_ref[...], win_ref[...], convw_ref[...],
                     convb_ref[...], wxp_ref[...], bdt_ref[...], alogT_ref[...],
                     dvec_ref[...], wout_ref[...])
    # final RMSNorm + tied lm_head (padded to 128 lanes -> unmasked stores)
    ms = jnp.mean(h * h, axis=-1, keepdims=True)
    hn = h * jax.lax.rsqrt(ms + EPS) * normw_ref[...]
    out_ref[0] = jnp.dot(hn.astype(whead_ref.dtype), whead_ref[...],
                         preferred_element_type=jnp.float32)


def _weight_specs(weights):
    # all weights are small 2-D tiles, fully resident every grid step
    return [pl.BlockSpec(w.shape, lambda i: (0, 0)) for w in weights]


def residual_block(x, lp):
    """Standalone layer kernel (only used when N_LAYER > 1)."""
    b, l, d = x.shape
    weights = [lp["rms_w"], lp["w_in"], lp["conv_w"], lp["conv_b"], lp["w_xp"],
               lp["b_dt"], lp["A_logT"], lp["D"], lp["w_out"]]
    return pl.pallas_call(
        layer_kernel,
        out_shape=jax.ShapeDtypeStruct((b, l, d), jnp.float32),
        grid=(b,),
        in_specs=[pl.BlockSpec((1, l, d), lambda i: (i, 0, 0))] + _weight_specs(weights),
        out_specs=pl.BlockSpec((1, l, d), lambda i: (i, 0, 0)),
        input_output_aliases={0: 0},
        compiler_params=pltpu.CompilerParams(dimension_semantics=("parallel",)),
    )(x, *weights)


def last_block_and_head(x, lp, norm_f_w, w_head):
    """Fused: last ResidualBlock + final RMSNorm + tied lm_head, one pallas_call."""
    b, l, d = x.shape
    vpad = w_head.shape[1]
    weights = [lp["rms_w"], lp["w_in"], lp["conv_w"], lp["conv_b"], lp["w_xp"],
               lp["b_dt"], lp["A_logT"], lp["D"], lp["w_out"], norm_f_w, w_head]
    return pl.pallas_call(
        fused_layer_head_kernel,
        out_shape=jax.ShapeDtypeStruct((b, l, vpad), jnp.float32),
        grid=(b,),
        in_specs=[pl.BlockSpec((1, l, d), lambda i: (i, 0, 0))] + _weight_specs(weights),
        out_specs=pl.BlockSpec((1, l, vpad), lambda i: (i, 0, 0)),
        compiler_params=pltpu.CompilerParams(dimension_semantics=("parallel",)),
    )(x, *weights)


def init_params(key):
    ks = jax.random.split(key, 2 + 10 * N_LAYER)

    def nrm(k, shape, scale=0.02):
        return (scale * jax.random.normal(k, shape)).astype(jnp.float32)

    emb = nrm(ks[0], (VOCAB, D_MODEL), 0.1)
    layers = []
    for li in range(N_LAYER):
        kk = ks[2 + 10 * li: 2 + 10 * (li + 1)]
        w_in_x = nrm(kk[0], (D_MODEL, D_INNER))
        w_in_res = nrm(kk[1], (D_MODEL, D_INNER))
        w_xp_dt = nrm(kk[2], (D_INNER, DT_RANK))
        w_xp_B = nrm(kk[3], (D_INNER, D_STATE))
        w_xp_C = nrm(kk[4], (D_INNER, D_STATE))
        w_dt = nrm(kk[5], (DT_RANK, D_INNER), 0.1)
        A_log = jnp.log(jnp.broadcast_to(
            jnp.arange(1, D_STATE + 1, dtype=jnp.float32), (D_INNER, D_STATE)))
        layers.append({
            "rms_w": jnp.ones((1, D_MODEL), jnp.float32),
            # in_proj halves concatenated -> one lane-dense (32, 128) matmul
            "w_in": jnp.concatenate([w_in_x, w_in_res], axis=1).astype(MATMUL_DTYPE),
            "conv_w": nrm(kk[6], (D_CONV, D_INNER), 0.1),     # depthwise taps
            "conv_b": nrm(kk[7], (1, D_INNER), 0.1),
            # x_proj fused with dt_proj (exact, by associativity):
            #   [Wxp_dt @ Wdt | Wxp_B | Wxp_C]  -> (D_INNER, D_INNER + 2*D_STATE)
            "w_xp": jnp.concatenate([w_xp_dt @ w_dt, w_xp_B, w_xp_C],
                                    axis=1).astype(MATMUL_DTYPE),
            "b_dt": nrm(kk[8], (1, D_INNER), 0.1),
            "A_logT": A_log.T,                                # (D_STATE, D_INNER)
            "D": jnp.ones((1, D_INNER), jnp.float32),
            "w_out": nrm(kk[9], (D_INNER, D_MODEL)).astype(MATMUL_DTYPE),
        })
    norm_f_w = jnp.ones((1, D_MODEL), jnp.float32)
    return {"embedding": emb, "layers": layers, "norm_f_w": norm_f_w}


@jax.jit
def mamba_forward(input_ids, params):
    # TODO(synk): token-id embedding gather stays in plain JAX (glue, not kernel work).
    x = jnp.take(params["embedding"], input_ids, axis=0)        # (B, L, D_MODEL)
    for lp in params["layers"][:-1]:
        x = residual_block(x, lp)
    # tied lm_head weight, zero-padded to 128 lanes for the kernel
    w_head = jnp.zeros((D_MODEL, VOCAB_PAD), MATMUL_DTYPE).at[:, :VOCAB].set(
        params["embedding"].T.astype(MATMUL_DTYPE))
    logits_pad = last_block_and_head(x, params["layers"][-1],
                                     params["norm_f_w"], w_head)
    return logits_pad[:, :, :VOCAB]                             # (B, L, VOCAB)


if __name__ == "__main__":
    key = jax.random.PRNGKey(0)
    pkey, ikey = jax.random.split(key)
    params = init_params(pkey)
    input_ids = jax.random.randint(ikey, (B, L), 0, VOCAB, dtype=jnp.int32)

    logits = mamba_forward(input_ids, params)
    jax.block_until_ready(logits)
    assert logits.shape == (B, L, VOCAB), logits.shape
    assert logits.dtype == jnp.float32
    assert bool(jnp.isfinite(logits).all())
    print("KERNEL_OK")
</pallas_src>

<mosaic_0001>
module attributes {stable_mosaic.version = 11 : i64} {
  func.func @fused_layer_head_kernel(%arg0: i32, %arg1: memref<1x8x32xf32, #tpu.memory_space<vmem>>, %arg2: memref<1x32xf32, #tpu.memory_space<vmem>>, %arg3: memref<32x128xbf16, #tpu.memory_space<vmem>>, %arg4: memref<4x64xf32, #tpu.memory_space<vmem>>, %arg5: memref<1x64xf32, #tpu.memory_space<vmem>>, %arg6: memref<64x96xbf16, #tpu.memory_space<vmem>>, %arg7: memref<1x64xf32, #tpu.memory_space<vmem>>, %arg8: memref<16x64xf32, #tpu.memory_space<vmem>>, %arg9: memref<1x64xf32, #tpu.memory_space<vmem>>, %arg10: memref<64x32xbf16, #tpu.memory_space<vmem>>, %arg11: memref<1x32xf32, #tpu.memory_space<vmem>>, %arg12: memref<32x128xbf16, #tpu.memory_space<vmem>>, %arg13: memref<1x8x128xf32, #tpu.memory_space<vmem>>) attributes {dimension_semantics = [#tpu.dimension_semantics<parallel>], iteration_bounds = array<i64: 2>, scalar_prefetch = 0 : i64, scratch_operands = 0 : i64, tpu.core_type = #tpu.core_type<tc>, window_params = [{transform_indices = @transform_0, window_bounds = array<i64: 1, 8, 32>}, {pipeline_mode = #tpu.pipeline_mode<synchronous>, transform_indices = @transform_1, window_bounds = array<i64: 1, 32>}, {pipeline_mode = #tpu.pipeline_mode<synchronous>, transform_indices = @transform_2, window_bounds = array<i64: 32, 128>}, {pipeline_mode = #tpu.pipeline_mode<synchronous>, transform_indices = @transform_3, window_bounds = array<i64: 4, 64>}, {pipeline_mode = #tpu.pipeline_mode<synchronous>, transform_indices = @transform_4, window_bounds = array<i64: 1, 64>}, {pipeline_mode = #tpu.pipeline_mode<synchronous>, transform_indices = @transform_5, window_bounds = array<i64: 64, 96>}, {pipeline_mode = #tpu.pipeline_mode<synchronous>, transform_indices = @transform_6, window_bounds = array<i64: 1, 64>}, {pipeline_mode = #tpu.pipeline_mode<synchronous>, transform_indices = @transform_7, window_bounds = array<i64: 16, 64>}, {pipeline_mode = #tpu.pipeline_mode<synchronous>, transform_indices = @transform_8, window_bounds = array<i64: 1, 64>}, {pipeline_mode = #tpu.pipeline_mode<synchronous>, transform_indices = @transform_9, window_bounds = array<i64: 64, 32>}, {pipeline_mode = #tpu.pipeline_mode<synchronous>, transform_indices = @transform_10, window_bounds = array<i64: 1, 32>}, {pipeline_mode = #tpu.pipeline_mode<synchronous>, transform_indices = @transform_11, window_bounds = array<i64: 32, 128>}, {transform_indices = @transform_12, window_bounds = array<i64: 1, 8, 128>}]} {
    %c0 = arith.constant 0 : index
    %c0_0 = arith.constant 0 : index
    %c0_1 = arith.constant 0 : index
    %0 = vector.load %arg1[%c0, %c0_0, %c0_1] : memref<1x8x32xf32, #tpu.memory_space<vmem>>, vector<1x8x32xf32>
    %1 = vector.shape_cast %0 : vector<1x8x32xf32> to vector<8x32xf32>
    %c0_2 = arith.constant 0 : index
    %c0_3 = arith.constant 0 : index
    %2 = vector.load %arg2[%c0_2, %c0_3] : memref<1x32xf32, #tpu.memory_space<vmem>>, vector<1x32xf32>
    %c0_4 = arith.constant 0 : index
    %c0_5 = arith.constant 0 : index
    %3 = vector.load %arg3[%c0_4, %c0_5] : memref<32x128xbf16, #tpu.memory_space<vmem>>, vector<32x128xbf16>
    %c0_6 = arith.constant 0 : index
    %c0_7 = arith.constant 0 : index
    %4 = vector.load %arg4[%c0_6, %c0_7] : memref<4x64xf32, #tpu.memory_space<vmem>>, vector<4x64xf32>
    %c0_8 = arith.constant 0 : index
    %c0_9 = arith.constant 0 : index
    %5 = vector.load %arg5[%c0_8, %c0_9] : memref<1x64xf32, #tpu.memory_space<vmem>>, vector<1x64xf32>
    %c0_10 = arith.constant 0 : index
    %c0_11 = arith.constant 0 : index
    %6 = vector.load %arg6[%c0_10, %c0_11] : memref<64x96xbf16, #tpu.memory_space<vmem>>, vector<64x96xbf16>
    %c0_12 = arith.constant 0 : index
    %c0_13 = arith.constant 0 : index
    %7 = vector.load %arg7[%c0_12, %c0_13] : memref<1x64xf32, #tpu.memory_space<vmem>>, vector<1x64xf32>
    %c0_14 = arith.constant 0 : index
    %c0_15 = arith.constant 0 : index
    %8 = vector.load %arg8[%c0_14, %c0_15] : memref<16x64xf32, #tpu.memory_space<vmem>>, vector<16x64xf32>
    %c0_16 = arith.constant 0 : index
    %c0_17 = arith.constant 0 : index
    %9 = vector.load %arg9[%c0_16, %c0_17] : memref<1x64xf32, #tpu.memory_space<vmem>>, vector<1x64xf32>
    %c0_18 = arith.constant 0 : index
    %c0_19 = arith.constant 0 : index
    %10 = vector.load %arg10[%c0_18, %c0_19] : memref<64x32xbf16, #tpu.memory_space<vmem>>, vector<64x32xbf16>
    %11 = arith.mulf %1, %1 : vector<8x32xf32>
    %cst = arith.constant dense<0.000000e+00> : vector<8xf32>
    %12 = vector.multi_reduction <add>, %11, %cst [1] : vector<8x32xf32> to vector<8xf32>
    %13 = vector.shape_cast %12 : vector<8xf32> to vector<8x1xf32>
    %cst_20 = arith.constant 3.200000e+01 : f32
    %14 = vector.broadcast %cst_20 : f32 to vector<8x1xf32>
    %15 = arith.divf %13, %14 : vector<8x1xf32>
    %cst_21 = arith.constant 9.99999974E-6 : f32
    %16 = vector.broadcast %cst_21 : f32 to vector<8x1xf32>
    %17 = arith.addf %15, %16 : vector<8x1xf32>
    %18 = math.rsqrt %17 : vector<8x1xf32>
    %19 = vector.broadcast %18 : vector<8x1xf32> to vector<8x32xf32>
    %20 = arith.mulf %1, %19 : vector<8x32xf32>
    %21 = vector.broadcast %2 : vector<1x32xf32> to vector<8x32xf32>
    %22 = arith.mulf %20, %21 : vector<8x32xf32>
    %23 = arith.truncf %22 : vector<8x32xf32> to vector<8x32xbf16>
    %cst_22 = arith.constant dense<0.000000e+00> : vector<8x128xf32>
    %24 = tpu.matmul %23, %3, %cst_22 {dimension_numbers = #tpu.dot_dimension_numbers<[1], [0], [0], [1], [0, 0, 1, 1], [], []>} : vector<8x32xbf16>, vector<32x128xbf16>, vector<8x128xf32> -> vector<8x128xf32>
    %25 = vector.extract_strided_slice %24 {offsets = [0, 0], sizes = [8, 64], strides = [1, 1]} : vector<8x128xf32> to vector<8x64xf32>
    %26 = vector.extract_strided_slice %24 {offsets = [0, 64], sizes = [8, 64], strides = [1, 1]} : vector<8x128xf32> to vector<8x64xf32>
    %27 = tpu.iota {dimensions = array<i32: 0>} : vector<8x64xi32>
    %cst_23 = arith.constant 0.000000e+00 : f32
    %28 = vector.broadcast %cst_23 : f32 to vector<8x64xf32>
    %29 = vector.broadcast %5 : vector<1x64xf32> to vector<8x64xf32>
    %30 = arith.addf %28, %29 : vector<8x64xf32>
    %c3_i32 = arith.constant 3 : i32
    %31 = vector.broadcast %c3_i32 : i32 to vector<8x64xi32>
    %32 = arith.cmpi sge, %27, %31 : vector<8x64xi32>
    %c3_i32_24 = arith.constant 3 : i32
    %33 = tpu.dynamic_rotate %25 by %c3_i32_24 dim 0 : vector<8x64xf32>, i32 -> vector<8x64xf32>
    %cst_25 = arith.constant 0.000000e+00 : f32
    %34 = vector.broadcast %cst_25 : f32 to vector<8x64xf32>
    %35 = arith.select %32, %33, %34 : vector<8x64xi1>, vector<8x64xf32>
    %36 = vector.extract_strided_slice %4 {offsets = [0, 0], sizes = [1, 64], strides = [1, 1]} : vector<4x64xf32> to vector<1x64xf32>
    %37 = vector.shape_cast %36 : vector<1x64xf32> to vector<64xf32>
    %38 = vector.shape_cast %37 : vector<64xf32> to vector<1x64xf32>
    %39 = vector.broadcast %38 : vector<1x64xf32> to vector<8x64xf32>
    %40 = arith.mulf %39, %35 : vector<8x64xf32>
    %41 = arith.addf %30, %40 : vector<8x64xf32>
    %c2_i32 = arith.constant 2 : i32
    %42 = vector.broadcast %c2_i32 : i32 to vector<8x64xi32>
    %43 = arith.cmpi sge, %27, %42 : vector<8x64xi32>
    %c2_i32_26 = arith.constant 2 : i32
    %44 = tpu.dynamic_rotate %25 by %c2_i32_26 dim 0 : vector<8x64xf32>, i32 -> vector<8x64xf32>
    %cst_27 = arith.constant 0.000000e+00 : f32
    %45 = vector.broadcast %cst_27 : f32 to vector<8x64xf32>
    %46 = arith.select %43, %44, %45 : vector<8x64xi1>, vector<8x64xf32>
    %47 = vector.extract_strided_slice %4 {offsets = [1, 0], sizes = [1, 64], strides = [1, 1]} : vector<4x64xf32> to vector<1x64xf32>
    %48 = vector.shape_cast %47 : vector<1x64xf32> to vector<64xf32>
    %49 = vector.shape_cast %48 : vector<64xf32> to vector<1x64xf32>
    %50 = vector.broadcast %49 : vector<1x64xf32> to vector<8x64xf32>
    %51 = arith.mulf %50, %46 : vector<8x64xf32>
    %52 = arith.addf %41, %51 : vector<8x64xf32>
    %c1_i32 = arith.constant 1 : i32
    %53 = vector.broadcast %c1_i32 : i32 to vector<8x64xi32>
    %54 = arith.cmpi sge, %27, %53 : vector<8x64xi32>
    %c1_i32_28 = arith.constant 1 : i32
    %55 = tpu.dynamic_rotate %25 by %c1_i32_28 dim 0 : vector<8x64xf32>, i32 -> vector<8x64xf32>
    %cst_29 = arith.constant 0.000000e+00 : f32
    %56 = vector.broadcast %cst_29 : f32 to vector<8x64xf32>
    %57 = arith.select %54, %55, %56 : vector<8x64xi1>, vector<8x64xf32>
    %58 = vector.extract_strided_slice %4 {offsets = [2, 0], sizes = [1, 64], strides = [1, 1]} : vector<4x64xf32> to vector<1x64xf32>
    %59 = vector.shape_cast %58 : vector<1x64xf32> to vector<64xf32>
    %60 = vector.shape_cast %59 : vector<64xf32> to vector<1x64xf32>
    %61 = vector.broadcast %60 : vector<1x64xf32> to vector<8x64xf32>
    %62 = arith.mulf %61, %57 : vector<8x64xf32>
    %63 = arith.addf %52, %62 : vector<8x64xf32>
    %64 = vector.extract_strided_slice %4 {offsets = [3, 0], sizes = [1, 64], strides = [1, 1]} : vector<4x64xf32> to vector<1x64xf32>
    %65 = vector.shape_cast %64 : vector<1x64xf32> to vector<64xf32>
    %66 = vector.shape_cast %65 : vector<64xf32> to vector<1x64xf32>
    %67 = vector.broadcast %66 : vector<1x64xf32> to vector<8x64xf32>
    %68 = arith.mulf %67, %25 : vector<8x64xf32>
    %69 = arith.addf %63, %68 : vector<8x64xf32>
    %cst_30 = arith.constant 0.000000e+00 : f32
    %70 = vector.broadcast %cst_30 : f32 to vector<8x64xf32>
    %71 = arith.subf %70, %69 : vector<8x64xf32>
    %72 = math.exp %71 : vector<8x64xf32>
    %cst_31 = arith.constant 1.000000e+00 : f32
    %73 = vector.broadcast %cst_31 : f32 to vector<8x64xf32>
    %74 = arith.addf %73, %72 : vector<8x64xf32>
    %75 = arith.divf %69, %74 : vector<8x64xf32>
    %76 = arith.truncf %75 : vector<8x64xf32> to vector<8x64xbf16>
    %cst_32 = arith.constant dense<0.000000e+00> : vector<8x96xf32>
    %77 = tpu.matmul %76, %6, %cst_32 {dimension_numbers = #tpu.dot_dimension_numbers<[1], [0], [0], [1], [0, 0, 1, 1], [], []>} : vector<8x64xbf16>, vector<64x96xbf16>, vector<8x96xf32> -> vector<8x96xf32>
    %78 = vector.extract_strided_slice %77 {offsets = [0, 0], sizes = [8, 64], strides = [1, 1]} : vector<8x96xf32> to vector<8x64xf32>
    %79 = vector.broadcast %7 : vector<1x64xf32> to vector<8x64xf32>
    %80 = arith.addf %78, %79 : vector<8x64xf32>
    %cst_33 = arith.constant 0.000000e+00 : f32
    %81 = vector.broadcast %cst_33 : f32 to vector<8x64xf32>
    %82 = arith.maximumf %80, %81 : vector<8x64xf32>
    %83 = math.absf %80 : vector<8x64xf32>
    %cst_34 = arith.constant 0.000000e+00 : f32
    %84 = vector.broadcast %cst_34 : f32 to vector<8x64xf32>
    %85 = arith.subf %84, %83 : vector<8x64xf32>
    %86 = math.exp %85 : vector<8x64xf32>
    %cst_35 = arith.constant 1.000000e+00 : f32
    %87 = vector.broadcast %cst_35 : f32 to vector<8x64xf32>
    %88 = arith.addf %87, %86 : vector<8x64xf32>
    %89 = math.log %88 : vector<8x64xf32>
    %90 = arith.addf %82, %89 : vector<8x64xf32>
    %91 = vector.extract_strided_slice %77 {offsets = [0, 64], sizes = [8, 16], strides = [1, 1]} : vector<8x96xf32> to vector<8x16xf32>
    %92 = vector.extract_strided_slice %77 {offsets = [0, 80], sizes = [8, 16], strides = [1, 1]} : vector<8x96xf32> to vector<8x16xf32>
    %93 = math.exp %8 : vector<16x64xf32>
    %cst_36 = arith.constant 0.000000e+00 : f32
    %94 = vector.broadcast %cst_36 : f32 to vector<16x64xf32>
    %95 = arith.subf %94, %93 : vector<16x64xf32>
    %96 = vector.shape_cast %90 : vector<8x64xf32> to vector<8x1x64xf32>
    %97 = vector.shape_cast %95 : vector<16x64xf32> to vector<1x16x64xf32>
    %98 = vector.broadcast %96 : vector<8x1x64xf32> to vector<8x16x64xf32>
    %99 = vector.broadcast %97 : vector<1x16x64xf32> to vector<8x16x64xf32>
    %100 = arith.mulf %98, %99 : vector<8x16x64xf32>
    %101 = math.exp %100 : vector<8x16x64xf32>
    %102 = vector.shape_cast %90 : vector<8x64xf32> to vector<8x1x64xf32>
    %103 = vector.shape_cast %91 : vector<8x16xf32> to vector<8x16x1xf32>
    %104 = vector.broadcast %102 : vector<8x1x64xf32> to vector<8x16x64xf32>
    %105 = vector.broadcast %103 : vector<8x16x1xf32> to vector<8x16x64xf32>
    %106 = arith.mulf %104, %105 : vector<8x16x64xf32>
    %107 = vector.shape_cast %75 : vector<8x64xf32> to vector<8x1x64xf32>
    %108 = vector.broadcast %107 : vector<8x1x64xf32> to vector<8x16x64xf32>
    %109 = arith.mulf %106, %108 : vector<8x16x64xf32>
    %cst_37 = arith.constant 0.000000e+00 : f32
    %110 = vector.broadcast %cst_37 : f32 to vector<16x64xf32>
    %111 = vector.extract_strided_slice %101 {offsets = [0, 0, 0], sizes = [1, 16, 64], strides = [1, 1, 1]} : vector<8x16x64xf32> to vector<1x16x64xf32>
    %112 = vector.shape_cast %111 : vector<1x16x64xf32> to vector<16x64xf32>
    %113 = arith.mulf %112, %110 : vector<16x64xf32>
    %114 = vector.extract_strided_slice %109 {offsets = [0, 0, 0], sizes = [1, 16, 64], strides = [1, 1, 1]} : vector<8x16x64xf32> to vector<1x16x64xf32>
    %115 = vector.shape_cast %114 : vector<1x16x64xf32> to vector<16x64xf32>
    %116 = arith.addf %113, %115 : vector<16x64xf32>
    %117 = vector.extract_strided_slice %101 {offsets = [1, 0, 0], sizes = [1, 16, 64], strides = [1, 1, 1]} : vector<8x16x64xf32> to vector<1x16x64xf32>
    %118 = vector.shape_cast %117 : vector<1x16x64xf32> to vector<16x64xf32>
    %119 = arith.mulf %118, %116 : vector<16x64xf32>
    %120 = vector.extract_strided_slice %109 {offsets = [1, 0, 0], sizes = [1, 16, 64], strides = [1, 1, 1]} : vector<8x16x64xf32> to vector<1x16x64xf32>
    %121 = vector.shape_cast %120 : vector<1x16x64xf32> to vector<16x64xf32>
    %122 = arith.addf %119, %121 : vector<16x64xf32>
    %123 = vector.extract_strided_slice %101 {offsets = [2, 0, 0], sizes = [1, 16, 64], strides = [1, 1, 1]} : vector<8x16x64xf32> to vector<1x16x64xf32>
    %124 = vector.shape_cast %123 : vector<1x16x64xf32> to vector<16x64xf32>
    %125 = arith.mulf %124, %122 : vector<16x64xf32>
    %126 = vector.extract_strided_slice %109 {offsets = [2, 0, 0], sizes = [1, 16, 64], strides = [1, 1, 1]} : vector<8x16x64xf32> to vector<1x16x64xf32>
    %127 = vector.shape_cast %126 : vector<1x16x64xf32> to vector<16x64xf32>
    %128 = arith.addf %125, %127 : vector<16x64xf32>
    %129 = vector.extract_strided_slice %101 {offsets = [3, 0, 0], sizes = [1, 16, 64], strides = [1, 1, 1]} : vector<8x16x64xf32> to vector<1x16x64xf32>
    %130 = vector.shape_cast %129 : vector<1x16x64xf32> to vector<16x64xf32>
    %131 = arith.mulf %130, %128 : vector<16x64xf32>
    %132 = vector.extract_strided_slice %109 {offsets = [3, 0, 0], sizes = [1, 16, 64], strides = [1, 1, 1]} : vector<8x16x64xf32> to vector<1x16x64xf32>
    %133 = vector.shape_cast %132 : vector<1x16x64xf32> to vector<16x64xf32>
    %134 = arith.addf %131, %133 : vector<16x64xf32>
    %135 = vector.extract_strided_slice %101 {offsets = [4, 0, 0], sizes = [1, 16, 64], strides = [1, 1, 1]} : vector<8x16x64xf32> to vector<1x16x64xf32>
    %136 = vector.shape_cast %135 : vector<1x16x64xf32> to vector<16x64xf32>
    %137 = arith.mulf %136, %134 : vector<16x64xf32>
    %138 = vector.extract_strided_slice %109 {offsets = [4, 0, 0], sizes = [1, 16, 64], strides = [1, 1, 1]} : vector<8x16x64xf32> to vector<1x16x64xf32>
    %139 = vector.shape_cast %138 : vector<1x16x64xf32> to vector<16x64xf32>
    %140 = arith.addf %137, %139 : vector<16x64xf32>
    %141 = vector.extract_strided_slice %101 {offsets = [5, 0, 0], sizes = [1, 16, 64], strides = [1, 1, 1]} : vector<8x16x64xf32> to vector<1x16x64xf32>
    %142 = vector.shape_cast %141 : vector<1x16x64xf32> to vector<16x64xf32>
    %143 = arith.mulf %142, %140 : vector<16x64xf32>
    %144 = vector.extract_strided_slice %109 {offsets = [5, 0, 0], sizes = [1, 16, 64], strides = [1, 1, 1]} : vector<8x16x64xf32> to vector<1x16x64xf32>
    %145 = vector.shape_cast %144 : vector<1x16x64xf32> to vector<16x64xf32>
    %146 = arith.addf %143, %145 : vector<16x64xf32>
    %147 = vector.extract_strided_slice %101 {offsets = [6, 0, 0], sizes = [1, 16, 64], strides = [1, 1, 1]} : vector<8x16x64xf32> to vector<1x16x64xf32>
    %148 = vector.shape_cast %147 : vector<1x16x64xf32> to vector<16x64xf32>
    %149 = arith.mulf %148, %146 : vector<16x64xf32>
    %150 = vector.extract_strided_slice %109 {offsets = [6, 0, 0], sizes = [1, 16, 64], strides = [1, 1, 1]} : vector<8x16x64xf32> to vector<1x16x64xf32>
    %151 = vector.shape_cast %150 : vector<1x16x64xf32> to vector<16x64xf32>
    %152 = arith.addf %149, %151 : vector<16x64xf32>
    %153 = vector.extract_strided_slice %101 {offsets = [7, 0, 0], sizes = [1, 16, 64], strides = [1, 1, 1]} : vector<8x16x64xf32> to vector<1x16x64xf32>
    %154 = vector.shape_cast %153 : vector<1x16x64xf32> to vector<16x64xf32>
    %155 = arith.mulf %154, %152 : vector<16x64xf32>
    %156 = vector.extract_strided_slice %109 {offsets = [7, 0, 0], sizes = [1, 16, 64], strides = [1, 1, 1]} : vector<8x16x64xf32> to vector<1x16x64xf32>
    %157 = vector.shape_cast %156 : vector<1x16x64xf32> to vector<16x64xf32>
    %158 = arith.addf %155, %157 : vector<16x64xf32>
    %159 = vector.shape_cast %116 : vector<16x64xf32> to vector<1x16x64xf32>
    %160 = vector.shape_cast %122 : vector<16x64xf32> to vector<1x16x64xf32>
    %161 = vector.shape_cast %128 : vector<16x64xf32> to vector<1x16x64xf32>
    %162 = vector.shape_cast %134 : vector<16x64xf32> to vector<1x16x64xf32>
    %163 = vector.shape_cast %140 : vector<16x64xf32> to vector<1x16x64xf32>
    %164 = vector.shape_cast %146 : vector<16x64xf32> to vector<1x16x64xf32>
    %165 = vector.shape_cast %152 : vector<16x64xf32> to vector<1x16x64xf32>
    %166 = vector.shape_cast %158 : vector<16x64xf32> to vector<1x16x64xf32>
    %167 = tpu.concatenate %159, %160, %161, %162, %163, %164, %165, %166 in 0 : vector<1x16x64xf32>, vector<1x16x64xf32>, vector<1x16x64xf32>, vector<1x16x64xf32>, vector<1x16x64xf32>, vector<1x16x64xf32>, vector<1x16x64xf32>, vector<1x16x64xf32> -> vector<8x16x64xf32>
    %168 = vector.shape_cast %92 : vector<8x16xf32> to vector<8x16x1xf32>
    %169 = vector.broadcast %168 : vector<8x16x1xf32> to vector<8x16x64xf32>
    %170 = arith.mulf %167, %169 : vector<8x16x64xf32>
    %cst_38 = arith.constant dense<0.000000e+00> : vector<8x64xf32>
    %171 = vector.multi_reduction <add>, %170, %cst_38 [1] : vector<8x16x64xf32> to vector<8x64xf32>
    %172 = vector.broadcast %9 : vector<1x64xf32> to vector<8x64xf32>
    %173 = arith.mulf %75, %172 : vector<8x64xf32>
    %174 = arith.addf %171, %173 : vector<8x64xf32>
    %cst_39 = arith.constant 0.000000e+00 : f32
    %175 = vector.broadcast %cst_39 : f32 to vector<8x64xf32>
    %176 = arith.subf %175, %26 : vector<8x64xf32>
    %177 = math.exp %176 : vector<8x64xf32>
    %cst_40 = arith.constant 1.000000e+00 : f32
    %178 = vector.broadcast %cst_40 : f32 to vector<8x64xf32>
    %179 = arith.addf %178, %177 : vector<8x64xf32>
    %180 = arith.divf %26, %179 : vector<8x64xf32>
    %181 = arith.mulf %174, %180 : vector<8x64xf32>
    %182 = arith.truncf %181 : vector<8x64xf32> to vector<8x64xbf16>
    %cst_41 = arith.constant dense<0.000000e+00> : vector<8x32xf32>
    %183 = tpu.matmul %182, %10, %cst_41 {dimension_numbers = #tpu.dot_dimension_numbers<[1], [0], [0], [1], [0, 0, 1, 1], [], []>} : vector<8x64xbf16>, vector<64x32xbf16>, vector<8x32xf32> -> vector<8x32xf32>
    %184 = arith.addf %183, %1 : vector<8x32xf32>
    %185 = arith.mulf %184, %184 : vector<8x32xf32>
    %cst_42 = arith.constant dense<0.000000e+00> : vector<8xf32>
    %186 = vector.multi_reduction <add>, %185, %cst_42 [1] : vector<8x32xf32> to vector<8xf32>
    %187 = vector.shape_cast %186 : vector<8xf32> to vector<8x1xf32>
    %cst_43 = arith.constant 3.200000e+01 : f32
    %188 = vector.broadcast %cst_43 : f32 to vector<8x1xf32>
    %189 = arith.divf %187, %188 : vector<8x1xf32>
    %cst_44 = arith.constant 9.99999974E-6 : f32
    %190 = vector.broadcast %cst_44 : f32 to vector<8x1xf32>
    %191 = arith.addf %189, %190 : vector<8x1xf32>
    %192 = math.rsqrt %191 : vector<8x1xf32>
    %193 = vector.broadcast %192 : vector<8x1xf32> to vector<8x32xf32>
    %194 = arith.mulf %184, %193 : vector<8x32xf32>
    %c0_45 = arith.constant 0 : index
    %c0_46 = arith.constant 0 : index
    %195 = vector.load %arg11[%c0_45, %c0_46] : memref<1x32xf32, #tpu.memory_space<vmem>>, vector<1x32xf32>
    %196 = vector.broadcast %195 : vector<1x32xf32> to vector<8x32xf32>
    %197 = arith.mulf %194, %196 : vector<8x32xf32>
    %198 = arith.truncf %197 : vector<8x32xf32> to vector<8x32xbf16>
    %c0_47 = arith.constant 0 : index
    %c0_48 = arith.constant 0 : index
    %199 = vector.load %arg12[%c0_47, %c0_48] : memref<32x128xbf16, #tpu.memory_space<vmem>>, vector<32x128xbf16>
    %cst_49 = arith.constant dense<0.000000e+00> : vector<8x128xf32>
    %200 = tpu.matmul %198, %199, %cst_49 {dimension_numbers = #tpu.dot_dimension_numbers<[1], [0], [0], [1], [0, 0, 1, 1], [], []>} : vector<8x32xbf16>, vector<32x128xbf16>, vector<8x128xf32> -> vector<8x128xf32>
    %c0_50 = arith.constant 0 : index
    %c0_51 = arith.constant 0 : index
    %c0_52 = arith.constant 0 : index
    %201 = vector.load %arg13[%c0_50, %c0_51, %c0_52] : memref<1x8x128xf32, #tpu.memory_space<vmem>>, vector<1x8x128xf32>
    %202 = vector.shape_cast %201 : vector<1x8x128xf32> to vector<8x128xf32>
    %203 = vector.shape_cast %200 : vector<8x128xf32> to vector<1x8x128xf32>
    tpu.vector_store %arg13[%c0_50, %c0_51, %c0_52], %203 {strides = array<i32>} : memref<1x8x128xf32, #tpu.memory_space<vmem>>, vector<1x8x128xf32>,
    return
  }
  func.func @transform_0(%arg0: i32) -> (i32, i32, i32) {
    %c0_i32 = arith.constant 0 : i32
    %c0_i32_0 = arith.constant 0 : i32
    %c0_i32_1 = arith.constant 0 : i32
    return %arg0, %c0_i32, %c0_i32_0 : i32, i32, i32
  }
  func.func @transform_1(%arg0: i32) -> (i32, i32) {
    %c0_i32 = arith.constant 0 : i32
    %c0_i32_0 = arith.constant 0 : i32
    %c0_i32_1 = arith.constant 0 : i32
    return %c0_i32, %c0_i32_0 : i32, i32
  }
  func.func @transform_2(%arg0: i32) -> (i32, i32) {
    %c0_i32 = arith.constant 0 : i32
    %c0_i32_0 = arith.constant 0 : i32
    %c0_i32_1 = arith.constant 0 : i32
    return %c0_i32, %c0_i32_0 : i32, i32
  }
  func.func @transform_3(%arg0: i32) -> (i32, i32) {
    %c0_i32 = arith.constant 0 : i32
    %c0_i32_0 = arith.constant 0 : i32
    %c0_i32_1 = arith.constant 0 : i32
    return %c0_i32, %c0_i32_0 : i32, i32
  }
  func.func @transform_4(%arg0: i32) -> (i32, i32) {
    %c0_i32 = arith.constant 0 : i32
    %c0_i32_0 = arith.constant 0 : i32
    %c0_i32_1 = arith.constant 0 : i32
    return %c0_i32, %c0_i32_0 : i32, i32
  }
  func.func @transform_5(%arg0: i32) -> (i32, i32) {
    %c0_i32 = arith.constant 0 : i32
    %c0_i32_0 = arith.constant 0 : i32
    %c0_i32_1 = arith.constant 0 : i32
    return %c0_i32, %c0_i32_0 : i32, i32
  }
  func.func @transform_6(%arg0: i32) -> (i32, i32) {
    %c0_i32 = arith.constant 0 : i32
    %c0_i32_0 = arith.constant 0 : i32
    %c0_i32_1 = arith.constant 0 : i32
    return %c0_i32, %c0_i32_0 : i32, i32
  }
  func.func @transform_7(%arg0: i32) -> (i32, i32) {
    %c0_i32 = arith.constant 0 : i32
    %c0_i32_0 = arith.constant 0 : i32
    %c0_i32_1 = arith.constant 0 : i32
    return %c0_i32, %c0_i32_0 : i32, i32
  }
  func.func @transform_8(%arg0: i32) -> (i32, i32) {
    %c0_i32 = arith.constant 0 : i32
    %c0_i32_0 = arith.constant 0 : i32
    %c0_i32_1 = arith.constant 0 : i32
    return %c0_i32, %c0_i32_0 : i32, i32
  }
  func.func @transform_9(%arg0: i32) -> (i32, i32) {
    %c0_i32 = arith.constant 0 : i32
    %c0_i32_0 = arith.constant 0 : i32
    %c0_i32_1 = arith.constant 0 : i32
    return %c0_i32, %c0_i32_0 : i32, i32
  }
  func.func @transform_10(%arg0: i32) -> (i32, i32) {
    %c0_i32 = arith.constant 0 : i32
    %c0_i32_0 = arith.constant 0 : i32
    %c0_i32_1 = arith.constant 0 : i32
    return %c0_i32, %c0_i32_0 : i32, i32
  }
  func.func @transform_11(%arg0: i32) -> (i32, i32) {
    %c0_i32 = arith.constant 0 : i32
    %c0_i32_0 = arith.constant 0 : i32
    %c0_i32_1 = arith.constant 0 : i32
    return %c0_i32, %c0_i32_0 : i32, i32
  }
  func.func @transform_12(%arg0: i32) -> (i32, i32, i32) {
    %c0_i32 = arith.constant 0 : i32
    %c0_i32_0 = arith.constant 0 : i32
    %c0_i32_1 = arith.constant 0 : i32
    return %arg0, %c0_i32, %c0_i32_0 : i32, i32, i32
  }
}

</mosaic_0001>

<bundles_post_ra>
// kernel: mamba_forward.1
= control target key start
LH: loop header
LB: loop body
LE: loop exit
PB: predicated region body
PF: predicated region fallthrough
CT: control target
= control target key end

     0   :  { %s2295_s0 = inlined_call_operand.vmem [shape: f32[2,8,32], index: 0, kind: input, shape index: {}]   ;;  %s2296_s1 = inlined_call_operand.vmem [shape: f32[1,32], index: 1, kind: input, shape index: {}]   ;;  %s2297_s2 = inlined_call_operand.vmem [shape: bf16[32,128], index: 2, kind: input, shape index: {}]   ;;  %s2298_s3 = inlined_call_operand.vmem [shape: f32[4,64], index: 3, kind: input, shape index: {}]   ;;  %s2299_s4 = inlined_call_operand.vmem [shape: f32[1,64], index: 4, kind: input, shape index: {}]   ;;  %s2300_s5 = inlined_call_operand.vmem [shape: bf16[64,96], index: 5, kind: input, shape index: {}]   ;;  %s2301_s6 = inlined_call_operand.vmem [shape: f32[1,64], index: 6, kind: input, shape index: {}]   ;;  %s2302_s7 = inlined_call_operand.vmem [shape: f32[16,64], index: 7, kind: input, shape index: {}]   ;;  %s2303_s8 = inlined_call_operand.vmem [shape: f32[1,64], index: 8, kind: input, shape index: {}]   ;;  %s2304_s9 = inlined_call_operand.vmem [shape: bf16[64,32], index: 9, kind: input, shape index: {}]   ;;  %s2305_s10 = inlined_call_operand.vmem [shape: f32[1,32], index: 10, kind: input, shape index: {}]   ;;  %s2306_s11 = inlined_call_operand.vmem [shape: bf16[32,128], index: 11, kind: input, shape index: {}]   ;;  %s2307_s12 = inlined_call_operand.hbm [shape: f32[2,8,128], index: 12, kind: output, shape index: {}]  }
   0x1   :  { %2308 = sst [smem:[#allocation5_spill]] %s2295_s0 }
   0x2   :  { %2309 = sst [smem:[#allocation6_spill]] %s2296_s1 }
   0x3   :  { %17 = vsyncpa [#allocation3], 0 }
   0x4   :  { %19 = vsyncpa [#allocation3 + $0x1], 0  ;;  %s1857_s21 = smov 0   ;;  %s1859_s22 = smov 0  }
   0x5   :  { %s1861_s23 = smov 0   ;;  %s1863_s24 = smov 0  }
   0x6 LB: > { %s1878_s25 = sadd.s32 4294967295, %s1785_s24   ;;  %s1530_s26 = sadd.s32 4294967294, %s1785_s24   ;;  %s1785_s24 = sphi %s1863_s24, %s2317_s24   ;;  %s1781_s23 = sphi %s1861_s23, %s2316_s23   ;;  %s1777_s22 = sphi %s1859_s22, %s2315_s22   ;;  %s1773_s21 = sphi %s1857_s21, %s2314_s21  }
   0x7   : > { %s1882_s27 = sadd.s32 1, %s1785_s24   ;;  %s289_s28 = sadd.s32 1, %s1781_s23 }
   0x8   : > { %s286_s29 = ssub.s32 %s1785_s24, %s1882_s27  ;;  %p299_p0 = scmp.ne.s32.totalorder %s1781_s23, %s1777_s22 }
   0x9   : > { %p287_p1 = scmp.eq.s32.totalorder %s286_s29, 0  ;;  %p300_p2 = scmp.eq.s32.totalorder %s1878_s25, 1 }
   0xa   : > { %p305_p3 = scmp.ne.s32.totalorder %s1777_s22, %s1773_s21  ;;  %p306_p4 = scmp.eq.s32.totalorder %s1530_s26, 1 }
   0xb   : > { %s1893_s30 = scalar_select %p287_p1, %s1781_s23, %s289_s28  }
   0xc   : > { %p1895_p5 = por %p300_p2, %p299_p0  ;;  %p1899_p6 = por %p306_p4, %p305_p3 }
   0xd   : > { %p1533_p7 = scmp.ge.s32.totalorder %s1785_s24, 1  ;;  %p364_p8 = scmp.lt.s32.totalorder %s1785_s24, 3 }
   0xf   : > { %p365_p9 = pnand %p1533_p7, %p364_p8 }
  0x10   : > { %p405_p10 = scmp.lt.s32.totalorder (!%p365_p9), %s1878_s25, 1  ;;  %s2312_s0 = sld [smem:[#allocation5_spill]] (!%p365_p9) }
  0x11   : > { %368 = sbr.rel (%p365_p9) target bundleno = 1417 (0x589), region = 68  ;;  %s2313_s1 = sld [smem:[#allocation6_spill]] (!%p365_p9) }
  0x12   : > { %s402_s20 = sand.u32 (!%p365_p9), 1, %s1777_s22  }
  0x13   : > { %s1534_s26 = sshll.u32 (!%p365_p9), %s402_s20, 3 }
  0x14   : > { %s404_s28 = scalar_lea.vmem (!%p365_p9), [#allocation2], %s1534_s26 }
  0x15   : > { %s1471_s29 = sshll.u32 (!%p365_p9), %s404_s28, 4  ;;  %s2251_s29 = int_to_ptr.vmem [resolvable:$true] %s1471_s29 }
  0x16   : > { %s406_s15 = scalar_select %p405_p10, %s1878_s25, 1  ;;  %vm439_vm0 = vcmask 261120   ;;  %v1660_v3 = vld [vmem:[%s2297_s2 + $0x8] sm:$0xff]   ;;  %v1787_v4 = vmov 0.0   ;;  %vm1788_vm1 = vmmov 0   ;;  %v1661_v5 = vld [vmem:[%s2297_s2] sm:$0xff]   ;;  %v511_v18 = vlaneseq }
  0x17   : > { %1577 = vmatprep.subr.bf16.mxu0 %v1787_v4  ;;  %1581 = vmatprep.mubr.msk.bf16.mxu0 %vm1788_vm1, %v1787_v4  ;;  %v1536_v10 = vld [vmem:[%s2313_s1] ss:$0 sm:$0xff]  ;;  %v1662_v14 = vld [vmem:[%s2300_s5 + $0x18] sm:$0xff]   ;;  %v1663_v15 = vld [vmem:[%s2300_s5 + $0x10] sm:$0xff]   ;;  %vm584_vm5 = vcmask 523264   ;;  %vm1292_vm6 = vcmask 1041409  }
  0x18   : > { %s1535_s16 = sshll.u32 %s406_s15, 3  ;;  %1578 = vmatpush3.bf16.msra.mxu0 %v1660_v3  ;;  %1585 = vmatprep.subr.bf16.mxu1 %v1787_v4  ;;  %v1664_v16 = vld [vmem:[%s2300_s5 + $0x8] sm:$0xff]   ;;  %v1665_v17 = vld [vmem:[%s2300_s5] sm:$0xff]   ;;  %v1950_v19 = vshrl.u32 %v511_v18, 7  ;;  %s1789_s15 = smov 64   ;;  %vm1295_vm7 = vcmask 1042434  }
  0x19   : > { %s1910_s19 = scalar_lea.vmem %s2312_s0, %s1535_s16  ;;  %1579 = vmatprep.subr.bf16.mxu0 %v1787_v4  ;;  %1593 = vmatprep.mubr.msk.bf16.mxu1 %vm1788_vm1, %v1787_v4  ;;  %v416_v22 = vld [vmem:[%s2298_s3] sm:$0xf]  ;;  %vm1298_vm8 = vcmask 1043459   ;;  %vm1301_vm9 = vcmask 1044484   ;;  %vm1304_vm10 = vcmask 1045509   ;;  %vm1307_vm11 = vcmask 1046534  }
  0x1a   : > { %v410_v0 = vld [vmem:[%s1910_s19] sm:$0xff]  ;;  %1586 = vmatpush3.bf16.msra.mxu1 %v1662_v14  ;;  %v1953_v20 = vsub.s32 0, %v1950_v19  ;;  %v534_v21 = vsub.s32 1, %v1950_v19  ;;  %vm520_vm2 = vcmp.ge.s32.totalorder %v1950_v19, 3  ;;  %vm529_vm3 = vcmp.ge.s32.totalorder %v1950_v19, 2  ;;  %s1558_s16 = sshll.u32 %s1878_s25, 7 }
  0x1b   : > { %v438_v1 = vmul.f32 %v410_v0, %v410_v0  ;;  %1587 = vmatprep.subr.bf16.mxu1 %v1787_v4  ;;  %v543_v25 = vsub.s32 2, %v1950_v19  ;;  %vm538_vm4 = vcmp.ge.s32.totalorder %v1950_v19, 1  ;;  %v549_v30 = vsub.s32 3, %v1950_v19  ;;  %v1540_v32 = vld [vmem:[%s2299_s4] ss:$0 sm:$0xff]  ;;  %s1725_s0 = scalar_lea.vmem %s2251_s29, 128 }
  0x1c   : > { %1580 = vmatpush3.bf16.msra.mxu0 %v1661_v5  ;;  %v526_v24 = vrot.slane %v416_v22, %v1953_v20  ;;  %v535_v29 = vrot.slane %v416_v22, %v534_v21  ;;  %v838_v57 = vsub.s32 4, %v1950_v19  ;;  %v850_v63 = vsub.s32 5, %v1950_v19  ;;  %p1726_p11 = scmp.ne.s32.totalorder %s2251_s29, %s1725_s0  ;;  %s1791_s25 = smov [#allocation2]  }
  0x1d   : > { %v440_v2 = vsel %vm439_vm0, %v438_v1, 0.0  ;;  %1597 = vmatprep.subr.bf16.mxu0 %v1787_v4  ;;  %v544_v36 = vrot.slane %v416_v22, %v543_v25  ;;  %v550_v41 = vrot.slane %v416_v22, %v549_v30  ;;  %v862_v3 = vsub.s32 6, %v1950_v19  ;;  %s1729_s26 = sshll.u32 %s1791_s25, 4  ;;  %s1730_s26 = int_to_ptr.vmem [resolvable:$false] %s1729_s26 }
  0x1e   : > { %441 = vadd.xlane.f32.xlu0 %v440_v2  ;;  %1588 = vmatpush3.bf16.msra.mxu1 %v1663_v15  ;;  %vm1310_vm12 = vcmask 1047559   ;;  %p1727_p12 = pnand %p1726_p11, %p1895_p5  ;;  %s1731_s1 = scalar_lea.vmem %s1730_s26, 256 }
  0x1f   : > { %1589 = vmatprep.subr.bf16.mxu1 %v1787_v4  ;;  %p1732_p0 = scmp.lt.s32.totalorder %s2251_s29, %s1730_s26  ;;  %p1733_p1 = scmp.lt.s32.totalorder %s1731_s1, %s1725_s0 }
  0x20   : > { %p1728_p13 = pneg %p1727_p12 }
  0x21   : > { %p1734_p2 = por %p1733_p1, %p1732_p0 }
  0x22   : > { %1590 = vmatpush3.bf16.msra.mxu1 %v1664_v16 }
  0x23   : > { %1591 = vmatprep.subr.bf16.mxu1 %v1787_v4  ;;  %p1735_p3 = pnand %p1734_p2, %p1728_p13 }
  0x26   : > { %1592 = vmatpush3.bf16.msra.mxu1 %v1665_v17 }
  0x27   : > { %1609 = vmatprep.subr.bf16.mxu1 %v1787_v4 }
  0xa7   : > { %v442_v6 = vpop.xlane.xlu0 %441 }
  0xa8   : > { %v444_v7 = vmul.f32 0.03125, %v442_v6 }
  0xaa   : > { %v445_v8 = vadd.f32 1e-05, %v444_v7  ;;  %v874_v7 = vsub.s32 7, %v1950_v19 }
  0xac   : > { %1672 = vrsqrt.f32 %v445_v8 }
  0xb9   : > { %v1673_v9 = vpop.eup %1672 }
  0xba   : > { %v447_v11 = vmul.f32 %v1673_v9, %v410_v0  ;;  %v1546_v9 = vld [vmem:[%s2301_s6] ss:$0 sm:$0xff] }
  0xbc   : > { %v454_v12 = vmul.f32 %v1536_v10, %v447_v11 }
  0xbe   : > { %v455_v13 = vpack.c.bf16 %v454_v12, %v454_v12 }
  0xc0   : > { %1582 = vmatmul.mubr.msk.bf16.vlgmr.msra.gmra.mxu0 %vm439_vm0, %v455_v13 }
  0xc1   : > { %1605 = vmatprep.mubr.msk.bf16.mxu0 %vm1788_vm1, %v1787_v4 }
 0x180   : > { %v1959_v23 = vpop.f32.mrf.mxu0 }
 0x181   : > { %v521_v26 = vrot.slane %v1959_v23, 5  ;;  %v530_v27 = vrot.slane %v1959_v23, 6  ;;  %v539_v28 = vrot.slane %v1959_v23, 7  ;;  %v551_v46 = vmul.f32 %v550_v41, %v1959_v23 }
 0x182   : > { %v1583_v31 = vpop.f32.mrf.mxu0  ;;  %v1221_v60 = vsub.f32 0.0, %v1959_v23 }
 0x183   : > { %v522_v33 = vsel %vm520_vm2, %v521_v26, 0.0  ;;  %v531_v34 = vsel %vm529_vm3, %v530_v27, 0.0  ;;  %v540_v38 = vsel %vm538_vm4, %v539_v28, 0.0  ;;  %v427_v27 = vld [vmem:[%s2302_s7] sm:$0xff]  ;;  %v1790_v31 = vmov 1966171168  }
 0x184   : > { %v527_v35 = vmul.f32 %v526_v24, %v522_v33  ;;  %v508_v37 = vpop.f32.mrf.mxu0  ;;  %v536_v40 = vmul.f32 %v535_v29, %v531_v34  ;;  %v545_v44 = vmul.f32 %v544_v36, %v540_v38  ;;  %v1222_v1 = vmul.f32 1.442695, %v1221_v60 }
 0x186   : > { %v528_v39 = vadd.f32 %v1540_v32, %v527_v35  ;;  %v1584_v42 = vpop.f32.mrf.mxu0  ;;  %v653_v32 = vunpack.c.l.s4 %v1790_v31 }
 0x188   : > { %v537_v43 = vadd.f32 %v536_v40, %v528_v39  ;;  %v654_v35 = vunpack.c.0.s8 %v653_v32  ;;  %v1666_v40 = vld [vmem:[%s2304_s9 + $0x18] sm:$0xff]  }
 0x189   : > { %1598 = vmatpush3.bf16.msra.mxu0 %v1666_v40 }
 0x18a   : > { %v546_v45 = vadd.f32 %v545_v44, %v537_v43  ;;  %v2003_v39 = vsub.s32 %v654_v35, %v1950_v19  ;;  %1599 = vmatprep.subr.bf16.mxu0 %v1787_v4 }
 0x18c   : > { %v552_v47 = vadd.f32 %v551_v46, %v546_v45 }
 0x18e   : > { %v553_v48 = vsub.f32 0.0, %v552_v47 }
 0x190   : > { %v554_v49 = vmul.f32 1.442695, %v553_v48 }
 0x192   : > { %1674 = vpow2.f32 %v554_v49 }
 0x19f   : > { %v1675_v50 = vpop.eup %1674 }
 0x1a0   : > { %v556_v51 = vadd.f32 1.0, %v1675_v50 }
 0x1a2   : > { %1676 = vrcp.f32 %v556_v51  ;;  %v1668_v51 = vld [vmem:[%s2304_s9 + $0x8] sm:$0xff]  }
 0x1a3   : > { %1678 = vpow2.f32 %v1222_v1 }
 0x1af   : > { %v1677_v52 = vpop.eup %1676 }
 0x1b0   : > { %v1974_v53 = vmul.f32 %v1677_v52, %v552_v47  ;;  %v1679_v12 = vpop.eup %1678  ;;  %v1667_v47 = vld [vmem:[%s2304_s9 + $0x10] sm:$0xff]  }
 0x1b1   : > { %v1224_v14 = vadd.f32 1.0, %v1679_v12  ;;  %1600 = vmatpush3.bf16.msra.mxu0 %v1667_v47 }
 0x1b2   : > { %v559_v54 = vpack.c.bf16 %v1974_v53, %v1974_v53  ;;  %1601 = vmatprep.subr.bf16.mxu0 %v1787_v4 }
 0x1b3   : > { %1680 = vrcp.f32 %v1224_v14 }
 0x1b4   : > { %1594 = vmatmul.mubr.msk.bf16.vlgmr.msra.gmra.mxu1 %vm584_vm5, %v559_v54 }
 0x1b5   : > { %1613 = vmatprep.mubr.msk.bf16.mxu1 %vm1788_vm1, %v1787_v4  ;;  %1602 = vmatpush3.bf16.msra.mxu0 %v1668_v51 }
 0x1b6   : > { %1603 = vmatprep.subr.bf16.mxu0 %v1787_v4 }
 0x1c0   : > { %v1681_v17 = vpop.eup %1680 }
 0x1c1   : > { %v1226_v18 = vmul.f32 %v1681_v17, %v1959_v23  ;;  %v428_v23 = vld [vmem:[%s2302_s7 + $0x8] sm:$0xff] }
 0x1c2   : > { %v646_v28 = vmul.f32 1.442695, %v428_v23 }
 0x1c3   : > { %v1228_v22 = vrot.slane %v1226_v18, 1  ;;  %v1233_v26 = vrot.slane %v1226_v18, 6  ;;  %v1229_v34 = vrot.slane %v1226_v18, 2  ;;  %v1230_v38 = vrot.slane %v1226_v18, 3 }
 0x1c4   : > { %v1232_v42 = vrot.slane %v1226_v18, 5  ;;  %v1234_v19 = vrot.slane %v1226_v18, 7 }
 0x274   : > { %v622_v55 = vpop.f32.mrf.mxu1 }
 0x275   : > { %v791_v56 = vrot.slane %v622_v55, %v1953_v20  ;;  %v803_v61 = vrot.slane %v622_v55, %v534_v21  ;;  %v839_v62 = vrot.slane %v622_v55, %v838_v57  ;;  %v851_v2 = vrot.slane %v622_v55, %v850_v63 }
 0x276   : > { %v1595_v58 = vpop.f32.mrf.mxu1  ;;  %v815_v5 = vrot.slane %v622_v55, %v543_v25  ;;  %v863_v6 = vrot.slane %v622_v55, %v862_v3  ;;  %v875_v8 = vrot.slane %v622_v55, %v874_v7  ;;  %v827_v10 = vrot.slane %v622_v55, %v549_v30 }
 0x277   : > { %798 = vbcast.lane.b32.xlu1 %v791_v56, 328  ;;  %794 = vbcast.lane.b32.xlu0 %v791_v56, 320  ;;  %v634_v11 = vadd.f32 %v1546_v9, %v622_v55  ;;  %v1231_v25 = vrot.slane %v1226_v18, 4  ;;  %v644_v30 = vmul.f32 1.442695, %v427_v27  ;;  %v901_v7 = vcombine.high %v1974_v53, %v1974_v53 }
 0x278   : > { %v625_v59 = vpop.f32.mrf.mxu1 }
 0x279   : > { %v636_v13 = vand.u32 2147483647, %v634_v11  ;;  %v635_v36 = vmax.f32 %v634_v11, 0.0 }
 0x27a   : > { %v1596_v0 = vpop.f32.mrf.mxu1 }
 0x27b   : > { %806 = vbcast.lane.b32.xlu1 %v803_v61, 320  ;;  %842 = vbcast.lane.b32.xlu0 %v839_v62, 320  ;;  %v637_v15 = vsub.f32 0.0, %v636_v13  ;;  %v915_v13 = vrot.slane %v901_v7, %v2003_v39 }
 0x27d   : > { %v638_v16 = vmul.f32 1.442695, %v637_v15 }
 0x27f   : > { %810 = vbcast.lane.b32.xlu1 %v803_v61, 328  ;;  %854 = vbcast.lane.b32.xlu0 %v851_v2, 320  ;;  %1682 = vpow2.f32 %v638_v16 }
 0x283   : > { %818 = vbcast.lane.b32.xlu1 %v815_v5, 320  ;;  %866 = vbcast.lane.b32.xlu0 %v863_v6, 320 }
 0x287   : > { %822 = vbcast.lane.b32.xlu1 %v815_v5, 328  ;;  %878 = vbcast.lane.b32.xlu0 %v875_v8, 320 }
 0x28b   : > { %830 = vbcast.lane.b32.xlu1 %v827_v10, 320  ;;  %1048 = vbcast.lane.b32.xlu0 %v803_v61, 336 }
 0x28c   : > { %v1683_v21 = vpop.eup %1682 }
 0x28d   : > { %v640_v24 = vadd.f32 1.0, %v1683_v21 }
 0x28f   : > { %834 = vbcast.lane.b32.xlu1 %v827_v10, 328  ;;  %1056 = vbcast.lane.b32.xlu0 %v815_v5, 336  ;;  %1684 = vlog2.f32 %v640_v24  ;;  %v917_v24 = vcombine.high %v915_v13, %v915_v13 }
 0x290   : > { %1686 = vpow2.f32 %v646_v28 }
 0x291   : > { %1688 = vpow2.f32 %v644_v30 }
 0x293   : > { %846 = vbcast.lane.b32.xlu1 %v839_v62, 328  ;;  %1040 = vbcast.lane.b32.xlu0 %v791_v56, 336 }
 0x297   : > { %858 = vbcast.lane.b32.xlu1 %v851_v2, 328  ;;  %1064 = vbcast.lane.b32.xlu0 %v827_v10, 336 }
 0x29b   : > { %870 = vbcast.lane.b32.xlu1 %v863_v6, 328  ;;  %1072 = vbcast.lane.b32.xlu0 %v839_v62, 336 }
 0x29c   : > { %v1685_v29 = vpop.eup %1684 }
 0x29d   : > { %v642_v33 = vmul.f32 0.6931472, %v1685_v29  ;;  %v1687_v44 = vpop.eup %1686 }
 0x29e   : > { %v1689_v45 = vpop.eup %1688  ;;  %v2017_v48 = vsub.f32 0.0, %v1687_v44 }
 0x29f   : > { %882 = vbcast.lane.b32.xlu1 %v875_v8, 328  ;;  %1080 = vbcast.lane.b32.xlu0 %v851_v2, 336  ;;  %v643_v37 = vadd.f32 %v642_v33, %v635_v36  ;;  %v2020_v50 = vsub.f32 0.0, %v1689_v45 }
 0x2a1   : > { %v658_v41 = vrot.slane %v643_v37, %v2003_v39  ;;  %v651_v0 = vcombine.high %v643_v37, %v643_v37  ;;  %v945_v37 = vrot.slane %v917_v24, %v2003_v39 }
 0x2a3   : > { %1052 = vbcast.lane.b32.xlu1 %v803_v61, 344  ;;  %1088 = vbcast.lane.b32.xlu0 %v863_v6, 336  ;;  %v674_v43 = vrot.slane %v658_v41, %v2003_v39  ;;  %v666_v46 = vcombine.high %v658_v41, %v658_v41 }
 0x2a5   : > { %v703_v49 = vrot.slane %v674_v43, %v1953_v20  ;;  %v688_v52 = vrot.slane %v666_v46, %v2003_v39  ;;  %v696_v58 = vcombine.high %v674_v43, %v674_v43 }
 0x2a7   : > { %1060 = vbcast.lane.b32.xlu1 %v815_v5, 344  ;;  %1096 = vbcast.lane.b32.xlu0 %v875_v8, 336  ;;  %v741_v54 = vmul.f32 %v703_v49, %v2017_v48  ;;  %v740_v55 = vmul.f32 %v703_v49, %v2020_v50  ;;  %v2033_v57 = vrot.slane %v688_v52, %v1953_v20 }
 0x2a8   : > { %v698_v1 = vcombine.high %v688_v52, %v688_v52 }
 0x2a9   : > { %v758_v59 = vmul.f32 1.442695, %v741_v54  ;;  %v756_v60 = vmul.f32 1.442695, %v740_v55  ;;  %v742_v61 = vmul.f32 %v2033_v57, %v2020_v50  ;;  %v743_v63 = vmul.f32 %v2033_v57, %v2017_v48 }
 0x2aa   : > { %v2051_v9 = vrot.slane %v698_v1, %v1953_v20 }
 0x2ab   : > { %1044 = vbcast.lane.b32.xlu1 %v791_v56, 344  ;;  %1237 = vrot.lane.b32.xlu0 %v1228_v22, %s1789_s15  ;;  %v1669_v56 = vld [vmem:[%s2304_s9] sm:$0xff]   ;;  %1690 = vpow2.f32 %v758_v59  ;;  %v762_v5 = vmul.f32 1.442695, %v743_v63  ;;  %v931_v22 = vrot.slane %v915_v13, %v2003_v39 }
 0x2ac   : > { %1604 = vmatpush3.bf16.msra.mxu0 %v1669_v56  ;;  %1692 = vpow2.f32 %v756_v60  ;;  %v746_v16 = vmul.f32 %v2051_v9, %v2020_v50  ;;  %v747_v31 = vmul.f32 %v2051_v9, %v2017_v48 }
 0x2ad   : > { %v2074_v36 = vrot.slane %v931_v22, %v1953_v20  ;;  %v947_v60 = vcombine.high %v931_v22, %v931_v22 }
 0x2ae   : > { %v768_v30 = vmul.f32 1.442695, %v746_v16  ;;  %v770_v47 = vmul.f32 1.442695, %v747_v31  ;;  %v949_v16 = vcombine.high %v945_v37, %v945_v37 }
 0x2af   : > { %1068 = vbcast.lane.b32.xlu1 %v827_v10, 344  ;;  %1235 = vrot.lane.b32.xlu0 %v1226_v18, %s1789_s15 }
 0x2b3   : > { %1076 = vbcast.lane.b32.xlu1 %v839_v62, 344  ;;  %1243 = vrot.lane.b32.xlu0 %v1231_v25, %s1789_s15  ;;  %v2039_v62 = vrot.slane %v696_v58, %v1953_v20  ;;  %v2091_v58 = vrot.slane %v945_v37, %v1953_v20 }
 0x2b5   : > { %v744_v3 = vmul.f32 %v2039_v62, %v2020_v50  ;;  %v745_v11 = vmul.f32 %v2039_v62, %v2017_v48 }
 0x2b7   : > { %1084 = vbcast.lane.b32.xlu1 %v851_v2, 344  ;;  %1247 = vrot.lane.b32.xlu0 %v1233_v26, %s1789_s15  ;;  %v760_v2 = vmul.f32 1.442695, %v742_v61  ;;  %v764_v10 = vmul.f32 1.442695, %v744_v3 }
 0x2b8   : > { %v766_v18 = vmul.f32 1.442695, %v745_v11  ;;  %v1691_v25 = vpop.eup %1690 }
 0x2b9   : > { %1694 = vpow2.f32 %v760_v2  ;;  %v1693_v26 = vpop.eup %1692  ;;  %v1007_v41 = vmul.f32 0.0, %v1691_v25 }
 0x2ba   : > { %1696 = vpow2.f32 %v762_v5  ;;  %v1006_v43 = vmul.f32 0.0, %v1693_v26 }
 0x2bb   : > { %1092 = vbcast.lane.b32.xlu1 %v863_v6, 344  ;;  %v908_v6 = vrot.slane %v1974_v53, %v2003_v39  ;;  %1698 = vpow2.f32 %v764_v10 }
 0x2bc   : > { %1700 = vpow2.f32 %v766_v18 }
 0x2bd   : > { %v916_v12 = vcombine.high %v908_v6, %v908_v6  ;;  %v924_v17 = vrot.slane %v908_v6, %v2003_v39  ;;  %1702 = vpow2.f32 %v768_v30 }
 0x2be   : > { %1704 = vpow2.f32 %v770_v47 }
 0x2bf   : > { %1100 = vbcast.lane.b32.xlu1 %v875_v8, 344  ;;  %v665_v8 = vrot.slane %v651_v0, %v2003_v39  ;;  %v2061_v21 = vrot.slane %v916_v12, %v2003_v39  ;;  %v953_v32 = vrot.slane %v924_v17, %v1953_v20  ;;  %v946_v59 = vcombine.high %v924_v17, %v924_v17 }
 0x2c1   : > { %v681_v14 = vrot.slane %v665_v8, %v2003_v39  ;;  %v667_v15 = vcombine.high %v665_v8, %v665_v8  ;;  %v957_v35 = vrot.slane %v2061_v21, %v1953_v20 }
 0x2c3   : > { %1239 = vrot.lane.b32.xlu1 %v1229_v34, %s1789_s15  ;;  %v2065_v28 = vrot.slane %v681_v14, %v1953_v20  ;;  %v695_v29 = vrot.slane %v667_v15, %v2003_v39  ;;  %v2109_v15 = vrot.slane %v947_v60, %v1953_v20 }
 0x2c5   : > { %v2080_v46 = vrot.slane %v695_v29, %v1953_v20  ;;  %v749_v56 = vmul.f32 %v2065_v28, %v2017_v48  ;;  %v699_v8 = vcombine.high %v695_v29, %v695_v29 }
 0x2c7   : > { %1241 = vrot.lane.b32.xlu1 %v1230_v38, %s1789_s15  ;;  %v697_v38 = vcombine.high %v681_v14, %v681_v14  ;;  %v750_v6 = vmul.f32 %v2080_v46, %v2020_v50  ;;  %v961_v14 = vrot.slane %v946_v59, %v1953_v20  ;;  %v774_v17 = vmul.f32 1.442695, %v749_v56 }
 0x2c9   : > { %v2101_v7 = vrot.slane %v697_v38, %v1953_v20  ;;  %v776_v29 = vmul.f32 1.442695, %v750_v6 }
 0x2cb   : > { %1245 = vrot.lane.b32.xlu1 %v1232_v42, %s1789_s15  ;;  %v753_v38 = vmul.f32 %v2101_v7, %v2017_v48 }
 0x2cd   : > { %v782_v59 = vmul.f32 1.442695, %v753_v38 }
 0x2cf   : > { %1249 = vrot.lane.b32.xlu1 %v1234_v19, %s1789_s15  ;;  %v748_v19 = vmul.f32 %v2065_v28, %v2020_v50  ;;  %s1458_s15 = scalar_lea.sflag [#allocation3], %s402_s20 }
 0x2d1   : > { %v772_v2 = vmul.f32 1.442695, %v748_v19 }
 0x2d3   : > { %1706 = vpow2.f32 %v772_v2 }
 0x2d4   : > { %1708 = vpow2.f32 %v774_v17 }
 0x2d5   : > { %1710 = vpow2.f32 %v776_v29 }
 0x2e9   : > { %v799_v23 = vpop.permute.xlu1 %798  ;;  %v795_v27 = vpop.permute.xlu0 %794 }
 0x2ea   : > { %v885_v33 = vmul.f32 %v799_v23, %v703_v49  ;;  %v884_v34 = vmul.f32 %v795_v27, %v703_v49  ;;  %v1695_v49 = vpop.eup %1694  ;;  %v752_v23 = vmul.f32 %v2101_v7, %v2020_v50  ;;  %v2120_v27 = vrot.slane %v699_v8, %v1953_v20 }
 0x2eb   : > { %v1697_v55 = vpop.eup %1696 }
 0x2ec   : > { %v991_v40 = vmul.f32 %v953_v32, %v885_v33  ;;  %v990_v42 = vmul.f32 %v953_v32, %v884_v34  ;;  %v1699_v13 = vpop.eup %1698  ;;  %v2127_v34 = vrot.slane %v949_v16, %v1953_v20  ;;  %v754_v19 = vmul.f32 %v2120_v27, %v2020_v50 }
 0x2ed   : > { %v807_v44 = vpop.permute.xlu1 %806  ;;  %v843_v45 = vpop.permute.xlu0 %842  ;;  %v755_v60 = vmul.f32 %v2120_v27, %v2017_v48 }
 0x2ee   : > { %v2082_v51 = vadd.f32 %v1007_v41, %v991_v40  ;;  %v2084_v52 = vadd.f32 %v1006_v43, %v990_v42  ;;  %v886_v39 = vmul.f32 %v807_v44, %v2033_v57  ;;  %v892_v54 = vmul.f32 %v843_v45, %v2065_v28  ;;  %v1701_v33 = vpop.eup %1700 }
 0x2ef   : > { %v780_v43 = vmul.f32 1.442695, %v752_v23  ;;  %v1703_v47 = vpop.eup %1702 }
 0x2f0   : > { %v992_v61 = vmul.f32 %v957_v35, %v886_v39  ;;  %v2094_v63 = vmul.f32 %v2074_v36, %v892_v54  ;;  %v1010_v0 = vmul.f32 %v1695_v49, %v2084_v52  ;;  %v1011_v1 = vmul.f32 %v1697_v55, %v2082_v51 }
 0x2f1   : > { %v811_v3 = vpop.permute.xlu1 %810  ;;  %v855_v5 = vpop.permute.xlu0 %854 }
 0x2f2   : > { %v887_v10 = vmul.f32 %v811_v3, %v2033_v57  ;;  %v894_v11 = vmul.f32 %v855_v5, %v2080_v46  ;;  %v2105_v12 = vadd.f32 %v1010_v0, %v992_v61  ;;  %v751_v57 = vmul.f32 %v2080_v46, %v2017_v48  ;;  %v1705_v3 = vpop.eup %1704 }
 0x2f4   : > { %v993_v18 = vmul.f32 %v957_v35, %v887_v10  ;;  %v2112_v22 = vmul.f32 %v2091_v58, %v894_v11  ;;  %v1014_v24 = vmul.f32 %v1699_v13, %v2105_v12  ;;  %v948_v35 = vcombine.high %v2061_v21, %v2061_v21  ;;  %v1707_v11 = vpop.eup %1706 }
 0x2f5   : > { %v819_v25 = vpop.permute.xlu1 %818  ;;  %v867_v26 = vpop.permute.xlu0 %866  ;;  %v778_v42 = vmul.f32 1.442695, %v751_v57  ;;  %v786_v13 = vmul.f32 1.442695, %v755_v60 }
 0x2f6   : > { %v888_v30 = vmul.f32 %v819_v25, %v2039_v62  ;;  %v896_v31 = vmul.f32 %v867_v26, %v2101_v7  ;;  %v2124_v32 = vadd.f32 %v1011_v1, %v993_v18  ;;  %v965_v50 = vrot.slane %v948_v35, %v1953_v20 }
 0x2f7   : > { %1712 = vpow2.f32 %v778_v42 }
 0x2f8   : > { %v994_v37 = vmul.f32 %v961_v14, %v888_v30  ;;  %v2134_v40 = vmul.f32 %v2109_v15, %v896_v31  ;;  %v1015_v41 = vmul.f32 %v1701_v33, %v2124_v32  ;;  %1714 = vpow2.f32 %v780_v43 }
 0x2f9   : > { %v823_v44 = vpop.permute.xlu1 %822  ;;  %v879_v45 = vpop.permute.xlu0 %878  ;;  %1716 = vpow2.f32 %v782_v59 }
 0x2fa   : > { %v889_v21 = vmul.f32 %v823_v44, %v2039_v62  ;;  %v898_v49 = vmul.f32 %v879_v45, %v2120_v27  ;;  %v2141_v39 = vadd.f32 %v1014_v24, %v994_v37  ;;  %v784_v62 = vmul.f32 1.442695, %v754_v19  ;;  %v1709_v24 = vpop.eup %1708 }
 0x2fb   : > { %v1711_v23 = vpop.eup %1710 }
 0x2fc   : > { %v995_v54 = vmul.f32 %v961_v14, %v889_v21  ;;  %v1004_v55 = vmul.f32 %v2127_v34, %v898_v49  ;;  %v1018_v56 = vmul.f32 %v1703_v47, %v2141_v39  ;;  %1718 = vpow2.f32 %v784_v62 }
 0x2fd   : > { %v831_v61 = vpop.permute.xlu1 %830  ;;  %v1049_v0 = vpop.permute.xlu0 %1048  ;;  %1720 = vpow2.f32 %v786_v13 }
 0x2fe   : > { %v890_v1 = vmul.f32 %v831_v61, %v2051_v9  ;;  %v1017_v2 = vadd.f32 %v1015_v41, %v995_v54 }
 0x300   : > { %v996_v5 = vmul.f32 %v965_v50, %v890_v1  ;;  %v1019_v6 = vmul.f32 %v1705_v3, %v1017_v2 }
 0x301   : > { %v835_v8 = vpop.permute.xlu1 %834  ;;  %v1057_v10 = vpop.permute.xlu0 %1056 }
 0x302   : > { %v891_v48 = vmul.f32 %v835_v8, %v2051_v9  ;;  %v2150_v14 = vadd.f32 %v1018_v56, %v996_v5 }
 0x304   : > { %v997_v20 = vmul.f32 %v965_v50, %v891_v48  ;;  %v1022_v16 = vmul.f32 %v1707_v11, %v2150_v14  ;;  %v1713_v33 = vpop.eup %1712 }
 0x305   : > { %v847_v17 = vpop.permute.xlu1 %846  ;;  %v1041_v18 = vpop.permute.xlu0 %1040 }
 0x306   : > { %v893_v57 = vmul.f32 %v847_v17, %v2065_v28  ;;  %v2155_v25 = vadd.f32 %v1022_v16, %v2094_v63  ;;  %v2157_v26 = vadd.f32 %v1019_v6, %v997_v20  ;;  %v1715_v63 = vpop.eup %1714 }
 0x307   : > { %v1717_v44 = vpop.eup %1716 }
 0x308   : > { %v999_v29 = vmul.f32 %v2074_v36, %v893_v57  ;;  %v1026_v9 = vmul.f32 %v1711_v23, %v2155_v25  ;;  %v1023_v30 = vmul.f32 %v1709_v24, %v2157_v26 }
 0x309   : > { %v859_v31 = vpop.permute.xlu1 %858  ;;  %v1065_v37 = vpop.permute.xlu0 %1064 }
 0x30a   : > { %v895_v35 = vmul.f32 %v859_v31, %v2080_v46  ;;  %v2164_v38 = vadd.f32 %v1026_v9, %v2112_v22  ;;  %v2166_v28 = vadd.f32 %v1023_v30, %v999_v29  ;;  %v1719_v22 = vpop.eup %1718 }
 0x30c   : > { %v1001_v41 = vmul.f32 %v2091_v58, %v895_v35  ;;  %v1030_v42 = vmul.f32 %v1715_v63, %v2164_v38  ;;  %v1027_v36 = vmul.f32 %v1713_v33, %v2166_v28 }
 0x30d   : > { %v871_v43 = vpop.permute.xlu1 %870  ;;  %v1073_v21 = vpop.permute.xlu0 %1072 }
 0x30e   : > { %v897_v45 = vmul.f32 %v871_v43, %v2101_v7  ;;  %v2173_v19 = vadd.f32 %v1030_v42, %v2134_v40  ;;  %v2175_v46 = vadd.f32 %v1027_v36, %v1001_v41  ;;  %v1721_v7 = vpop.eup %1720  ;;  %v1104_v40 = vmul.f32 %v1049_v0, %v2105_v12 }
 0x30f   : > { %v1102_v0 = vmul.f32 %v1041_v18, %v2084_v52  ;;  %v1108_v52 = vmul.f32 %v1065_v37, %v2150_v14 }
 0x310   : > { %v1003_v47 = vmul.f32 %v2109_v15, %v897_v45  ;;  %v1034_v49 = vmul.f32 %v1719_v22, %v2173_v19  ;;  %v1031_v58 = vmul.f32 %v1717_v44, %v2175_v46  ;;  %v1127_v5 = vsel %vm584_vm5, %v1104_v40, 0.0 }
 0x311   : > { %v883_v54 = vpop.permute.xlu1 %882  ;;  %v1081_v62 = vpop.permute.xlu0 %1080  ;;  %v1118_v57 = vsel %vm584_vm5, %v1102_v0, 0.0  ;;  %v1145_v41 = vsel %vm584_vm5, %v1108_v52, 0.0 }
 0x312   : > { %v899_v56 = vmul.f32 %v883_v54, %v2120_v27  ;;  %v2181_v59 = vadd.f32 %v1034_v49, %v1004_v55  ;;  %v2183_v60 = vadd.f32 %v1031_v58, %v1003_v47  ;;  %v1106_v27 = vmul.f32 %v1057_v10, %v2141_v39 }
 0x314   : > { %v1005_v50 = vmul.f32 %v2127_v34, %v899_v56  ;;  %v1035_v61 = vmul.f32 %v1721_v7, %v2183_v60  ;;  %v1136_v34 = vsel %vm584_vm5, %v1106_v27, 0.0  ;;  %v1112_v56 = vmul.f32 %v1081_v62, %v2164_v38 }
 0x315   : > { %v1053_v15 = vpop.permute.xlu1 %1052  ;;  %v1089_v13 = vpop.permute.xlu0 %1088 }
 0x316   : > { %v1105_v1 = vmul.f32 %v1053_v15, %v2124_v32  ;;  %v2189_v3 = vadd.f32 %v1035_v61, %v1005_v50  ;;  %v1547_v32 = vld [vmem:[%s2303_s8] ss:$0 sm:$0xff]  ;;  %v1114_v27 = vmul.f32 %v1089_v13, %v2173_v19  ;;  %v1163_v38 = vsel %vm584_vm5, %v1112_v56, 0.0 }
 0x318   : > { %v1128_v55 = vsel %vm584_vm5, %v1105_v1, 0.0  ;;  %v1172_v19 = vsel %vm584_vm5, %v1114_v27, 0.0 }
 0x319   : > { %v1129_v6 = vadd.f32 %v1128_v55, %v1127_v5  ;;  %v1061_v8 = vpop.permute.xlu1 %1060  ;;  %v1097_v31 = vpop.permute.xlu0 %1096 }
 0x31a   : > { %v1107_v11 = vmul.f32 %v1061_v8, %v1017_v2  ;;  %v2202_v2 = vmul.f32 %v1547_v32, %v1974_v53  ;;  %v1110_v53 = vmul.f32 %v1073_v21, %v2155_v25 }
 0x31b   : > { %v1130_v12 = vrot.slane %v1129_v6, 4 }
 0x31c   : > { %v1137_v48 = vsel %vm584_vm5, %v1107_v11, 0.0  ;;  %v1198_v42 = vrot.slane %v2202_v2, 1  ;;  %v1154_v54 = vsel %vm584_vm5, %v1110_v53, 0.0 }
 0x31d   : > { %v1131_v20 = vadd.f32 %v1130_v12, %v1129_v6  ;;  %v1138_v16 = vadd.f32 %v1137_v48, %v1136_v34  ;;  %v1045_v39 = vpop.permute.xlu1 %1044  ;;  %v1238_v25 = vpop.permute.xlu0 %1237 }
 0x31e   : > { %v1103_v10 = vmul.f32 %v1045_v39, %v2082_v51 }
 0x31f   : > { %v1132_v17 = vrot.slane %v1131_v20, 2  ;;  %v1139_v24 = vrot.slane %v1138_v16, 4 }
 0x320   : > { %v1119_v18 = vsel %vm584_vm5, %v1103_v10, 0.0 }
 0x321   : > { %v1140_v23 = vadd.f32 %v1139_v24, %v1138_v16  ;;  %v1120_v29 = vadd.f32 %v1119_v18, %v1118_v57  ;;  %v1133_v9 = vadd.f32 %v1132_v17, %v1131_v20  ;;  %v1069_v30 = vpop.permute.xlu1 %1068  ;;  %v1116_v17 = vmul.f32 %v1097_v31, %v2181_v59  ;;  %v1236_v57 = vpop.permute.xlu0 %1235 }
 0x322   : > { %v1109_v33 = vmul.f32 %v1069_v30, %v2157_v26 }
 0x323   : > { %v1141_v35 = vrot.slane %v1140_v23, 2  ;;  %v1121_v51 = vrot.slane %v1120_v29, 4  ;;  %v1134_v63 = vrot.slane %v1133_v9, 1  ;;  %v1181_v31 = vsel %vm584_vm5, %v1116_v17, 0.0 }
 0x324   : > { %v1146_v14 = vsel %vm584_vm5, %v1109_v33, 0.0 }
 0x325   : > { %v1122_v37 = vadd.f32 %v1121_v51, %v1120_v29  ;;  %v1135_v36 = vadd.f32 %v1134_v63, %v1133_v9  ;;  %v1147_v43 = vadd.f32 %v1146_v14, %v1145_v41  ;;  %v1077_v44 = vpop.permute.xlu1 %1076  ;;  %v1142_v45 = vadd.f32 %v1141_v35, %v1140_v23  ;;  %v1244_v56 = vpop.permute.xlu0 %1243 }
 0x326   : > { %v1111_v22 = vmul.f32 %v1077_v44, %v2166_v28  ;;  %v1199_v28 = vrot.slane %v2202_v2, 2  ;;  %v1200_v35 = vrot.slane %v2202_v2, 3 }
 0x327   : > { %v1123_v47 = vrot.slane %v1122_v37, 2  ;;  %v1214_v26 = vadd.f32 %v1198_v42, %v1135_v36  ;;  %v1148_v49 = vrot.slane %v1147_v43, 4  ;;  %v1143_v58 = vrot.slane %v1142_v45, 1 }
 0x328   : > { %v1155_v21 = vsel %vm584_vm5, %v1111_v22, 0.0 }
 0x329   : > { %v1260_v7 = vmul.f32 %v1238_v25, %v1214_v26  ;;  %v1149_v40 = vadd.f32 %v1148_v49, %v1147_v43  ;;  %v1124_v50 = vadd.f32 %v1123_v47, %v1122_v37  ;;  %v1156_v61 = vadd.f32 %v1155_v21, %v1154_v54  ;;  %v1085_v15 = vpop.permute.xlu1 %1084 }
 0x32a   : > { %v1113_v1 = vmul.f32 %v1085_v15, %v2175_v46  ;;  %v1144_v5 = vadd.f32 %v1143_v58, %v1142_v45  ;;  %v1201_v46 = vrot.slane %v2202_v2, 4 }
 0x32b   : > { %v1150_v55 = vrot.slane %v1149_v40, 2  ;;  %v1125_v6 = vrot.slane %v1124_v50, 1  ;;  %v1157_v8 = vrot.slane %v1156_v61, 4  ;;  %v1268_v62 = vpack.c.bf16 %v1260_v7, %v1260_v7 }
 0x32c   : > { %v1164_v11 = vsel %vm584_vm5, %v1113_v1, 0.0  ;;  %v1215_v12 = vadd.f32 %v1199_v28, %v1144_v5  ;;  %v1202_v28 = vrot.slane %v2202_v2, 5 }
 0x32d   : > { %v1126_v34 = vadd.f32 %v1125_v6, %v1124_v50  ;;  %v1158_v0 = vadd.f32 %v1157_v8, %v1156_v61  ;;  %v1165_v48 = vadd.f32 %v1164_v11, %v1163_v38  ;;  %v1093_v32 = vpop.permute.xlu1 %1092  ;;  %v1151_v16 = vadd.f32 %v1150_v55, %v1149_v40 }
 0x32e   : > { %v1115_v20 = vmul.f32 %v1093_v32, %v2183_v60  ;;  %v1284_v24 = vunpack.c.l.b16 %v1268_v62 }
 0x32f   : > { %v1213_v13 = vadd.f32 %v2202_v2, %v1126_v34  ;;  %v1159_v39 = vrot.slane %v1158_v0, 2  ;;  %v1166_v10 = vrot.slane %v1165_v48, 4  ;;  %v1152_v18 = vrot.slane %v1151_v16, 1 }
 0x330   : > { %v1173_v52 = vsel %vm584_vm5, %v1115_v20, 0.0  ;;  %v1291_v42 = vrot.slane %v1284_v24, 7 }
 0x331   : > { %v1259_v23 = vmul.f32 %v1236_v57, %v1213_v13  ;;  %v1160_v29 = vadd.f32 %v1159_v39, %v1158_v0  ;;  %v1167_v9 = vadd.f32 %v1166_v10, %v1165_v48  ;;  %v1174_v30 = vadd.f32 %v1173_v52, %v1172_v19  ;;  %v1101_v33 = vpop.permute.xlu1 %1100  ;;  %v1248_v13 = vpop.permute.xlu0 %1247 }
 0x332   : > { %v1117_v60 = vmul.f32 %v1101_v33, %v2189_v3  ;;  %v1153_v51 = vadd.f32 %v1152_v18, %v1151_v16  ;;  %v1204_v57 = vrot.slane %v2202_v2, 7 }
 0x333   : > { %v1267_v63 = vpack.c.bf16 %v1259_v23, %v1259_v23  ;;  %v1161_v41 = vrot.slane %v1160_v29, 1  ;;  %v1168_v53 = vrot.slane %v1167_v9, 2  ;;  %v1175_v59 = vrot.slane %v1174_v30, 4 }
 0x334   : > { %v1182_v14 = vsel %vm584_vm5, %v1117_v60, 0.0  ;;  %v1216_v37 = vadd.f32 %v1200_v35, %v1153_v51 }
 0x335   : > { %v1283_v36 = vunpack.c.l.b16 %v1267_v63  ;;  %v1162_v43 = vadd.f32 %v1161_v41, %v1160_v29  ;;  %v1176_v44 = vadd.f32 %v1175_v59, %v1174_v30  ;;  %v1183_v45 = vadd.f32 %v1182_v14, %v1181_v31  ;;  %v1240_v22 = vpop.permute.xlu1 %1239 }
 0x336   : > { %v1261_v47 = vmul.f32 %v1240_v22, %v1215_v12  ;;  %v1169_v3 = vadd.f32 %v1168_v53, %v1167_v9  ;;  %v1203_v12 = vrot.slane %v2202_v2, 6 }
 0x337   : > { %v1293_v26 = vsel %vm1292_vm6, %v1291_v42, %v1283_v36  ;;  %v1217_v49 = vadd.f32 %v1201_v46, %v1162_v43  ;;  %v1177_v58 = vrot.slane %v1176_v44, 2  ;;  %v1184_v54 = vrot.slane %v1183_v45, 4  ;;  %v1724_v36 = vld [vmem:[%s1910_s19] sm:$0xff]  ;;  %s2256_s19 = scalar_lea.hbm %s2307_s12, %s1558_s16 }
 0x338   : > { %v1269_v25 = vpack.c.bf16 %v1261_v47, %v1261_v47  ;;  %v1170_v21 = vrot.slane %v1169_v3, 1 }
 0x339   : > { %v1263_v7 = vmul.f32 %v1244_v56, %v1217_v49  ;;  %v1178_v40 = vadd.f32 %v1177_v58, %v1176_v44  ;;  %v1185_v50 = vadd.f32 %v1184_v54, %v1183_v45  ;;  %v1242_v61 = vpop.permute.xlu1 %1241  ;;  %v1671_v49 = vld [vmem:[%s2306_s11] sm:$0xff]  }
 0x33a   : > { %v1285_v15 = vunpack.c.l.b16 %v1269_v25  ;;  %v1262_v1 = vmul.f32 %v1242_v61, %v1216_v37  ;;  %v1171_v5 = vadd.f32 %v1170_v21, %v1169_v3  ;;  %v1553_v21 = vld [vmem:[%s2305_s10] ss:$0 sm:$0xff] }
 0x33b   : > { %v1271_v27 = vpack.c.bf16 %v1263_v7, %v1263_v7  ;;  %v1179_v55 = vrot.slane %v1178_v40, 1  ;;  %v1186_v6 = vrot.slane %v1185_v50, 2 }
 0x33c   : > { %v1294_v8 = vrot.slane %v1285_v15, 6  ;;  %v1270_v38 = vpack.c.bf16 %v1262_v1, %v1262_v1  ;;  %v1218_v62 = vadd.f32 %v1202_v28, %v1171_v5 }
 0x33d   : > { %v1287_v11 = vunpack.c.l.b16 %v1271_v27  ;;  %v1180_v34 = vadd.f32 %v1179_v55, %v1178_v40  ;;  %v1246_v0 = vpop.permute.xlu1 %1245  ;;  %v1187_v48 = vadd.f32 %v1186_v6, %v1185_v50 }
 0x33e   : > { %v1296_v32 = vsel %vm1295_vm7, %v1294_v8, %v1293_v26  ;;  %v1286_v46 = vunpack.c.l.b16 %v1270_v38  ;;  %v1264_v20 = vmul.f32 %v1246_v0, %v1218_v62  ;;  %v1670_v26 = vld [vmem:[%s2306_s11 + $0x8] sm:$0xff]  }
 0x33f   : > { %v1219_v16 = vadd.f32 %v1203_v12, %v1180_v34  ;;  %v1188_v19 = vrot.slane %v1187_v48, 1  ;;  %v1300_v17 = vrot.slane %v1287_v11, 4  ;;  %1610 = vmatpush3.bf16.msra.mxu1 %v1670_v26 }
 0x340   : > { %v1297_v39 = vrot.slane %v1286_v46, 5  ;;  %v1272_v10 = vpack.c.bf16 %v1264_v20, %v1264_v20  ;;  %1611 = vmatprep.subr.bf16.mxu1 %v1787_v4 }
 0x341   : > { %v1265_v24 = vmul.f32 %v1248_v13, %v1219_v16  ;;  %v1189_v52 = vadd.f32 %v1188_v19, %v1187_v48  ;;  %v1250_v60 = vpop.permute.xlu1 %1249 }
 0x342   : > { %v1299_v18 = vsel %vm1298_vm8, %v1297_v39, %v1296_v32  ;;  %v1288_v23 = vunpack.c.l.b16 %v1272_v10 }
 0x343   : > { %v1273_v29 = vpack.c.bf16 %v1265_v24, %v1265_v24  ;;  %v1302_v9 = vsel %vm1301_vm9, %v1300_v17, %v1299_v18  ;;  %v1220_v30 = vadd.f32 %v1204_v57, %v1189_v52  ;;  %1612 = vmatpush3.bf16.msra.mxu1 %v1671_v49 }
 0x344   : > { %v1303_v33 = vrot.slane %v1288_v23, 3 }
 0x345   : > { %v1266_v35 = vmul.f32 %v1250_v60, %v1220_v30  ;;  %v1289_v51 = vunpack.c.l.b16 %v1273_v29 }
 0x346   : > { %v1305_v63 = vsel %vm1304_vm10, %v1303_v33, %v1302_v9 }
 0x347   : > { %v1274_v41 = vpack.c.bf16 %v1266_v35, %v1266_v35  ;;  %v1306_v53 = vrot.slane %v1289_v51, 2 }
 0x349   : > { %v1290_v59 = vunpack.c.l.b16 %v1274_v41  ;;  %v1308_v31 = vsel %vm1307_vm11, %v1306_v53, %v1305_v63 }
 0x34b   : > { %v1309_v2 = vrot.slane %v1290_v59, 1 }
 0x34d   : > { %v1311_v42 = vsel %vm1310_vm12, %v1309_v2, %v1308_v31 }
 0x34e   : > { %v1312_v14 = vpack.c.b16 %v1311_v42, %v1311_v42 }
 0x350   : > { %1606 = vmatmul.mubr.msk.bf16.vlgmr.msra.gmra.mxu0 %vm584_vm5, %v1312_v14 }
 0x410   : > { %v1374_v37 = vpop.f32.mrf.mxu0 }
 0x411   : > { %v1375_v43 = vadd.f32 %v1724_v36, %v1374_v37 }
 0x412   : > { %v1607_v44 = vpop.f32.mrf.mxu0 }
 0x413   : > { %v1380_v45 = vmul.f32 %v1375_v43, %v1375_v43 }
 0x414   : > { %v1377_v22 = vpop.f32.mrf.mxu0 }
 0x415   : > { %v1381_v47 = vsel %vm439_vm0, %v1380_v45, 0.0 }
 0x416   : > { %1382 = vadd.xlane.f32.xlu0 %v1381_v47  ;;  %v1608_v3 = vpop.f32.mrf.mxu0 }
 0x49f   : > { %v1383_v58 = vpop.xlane.xlu0 %1382 }
 0x4a0   : > { %v1384_v54 = vmul.f32 0.03125, %v1383_v58 }
 0x4a2   : > { %v1385_v56 = vadd.f32 1e-05, %v1384_v54 }
 0x4a4   : > { %1722 = vrsqrt.f32 %v1385_v56 }
 0x4b1   : > { %v1723_v25 = vpop.eup %1722 }
 0x4b2   : > { %v1387_v7 = vmul.f32 %v1723_v25, %v1375_v43 }
 0x4b4   : > { %v1395_v40 = vmul.f32 %v1553_v21, %v1387_v7 }
 0x4b6   : > { %v1396_v50 = vpack.c.bf16 %v1395_v40, %v1395_v40 }
 0x4b8   : > { %1614 = vmatmul.mubr.msk.bf16.vlgmr.msra.gmra.mxu1 %vm439_vm0, %v1396_v50 }
 0x578   : > { %v1450_v4 = vpop.f32.mrf.mxu1 }
 0x579   : > { %1456 = vst [vmem:[%s404_s28] sm:$0xff] %v1450_v4 }
 0x57a   : > { %v1615_v61 = vpop.f32.mrf.mxu1 }
 0x57b   : > { %1738 = shalt.err (!%p1735_p3)
}
 0x57c   : > { %s1739_s28 = scalar_lea.hbm %s2256_s19, 128  ;;  %s1743_s17 = scalar_lea.hbm %s2307_s12, 256 }
 0x57d   : > { %p1740_p4 = scmp.ne.s32.totalorder %s2256_s19, %s1739_s28  ;;  %p1744_p9 = scmp.lt.s32.totalorder %s2256_s19, %s2307_s12 }
 0x57e   : > { %p1745_p10 = scmp.lt.s32.totalorder %s1743_s17, %s1739_s28 }
 0x57f   : > { %p1741_p7 = pnand %p1740_p4, %p1895_p5 }
 0x580   : > { %p1746_p11 = por %p1745_p10, %p1744_p9 }
 0x581   : > { %p1742_p8 = pneg %p1741_p7 }
 0x583   : > { %p1747_p12 = pnand %p1746_p11, %p1742_p8 }
 0x585   : > { %1750 = shalt.err (!%p1747_p12)
}
 0x586   : > { %1617 = dma.vmem_to_hbm [thread:$0]  (%p1895_p5), %s2251_s29, 128, %s2256_s19, %s1458_s15   ;;  %v1453_v15 = vpop.f32.mrf.mxu1 }
 0x588   : > { %v1616_v1 = vpop.f32.mrf.mxu1 }
 0x589 PF: > { %p1623_p13 = scmp.ge.s32.totalorder %s1785_s24, 2  ;;  %s1483_s0 = sand.u32 1, %s1773_s21  }
 0x58a   : > { %s1484_s1 = scalar_lea.sflag [#allocation3], %s1483_s0 }
 0x58b   : > { %p1620_p0 = pnand %p1623_p13, %p1899_p6 }
 0x58d   : > { %p1621_p1 = pneg %p1620_p0 }
 0x58f   : > { %1768 = dma.done.wait (%p1621_p1), %s1484_s1, 128  }
 0x590   : > { %1770 = vsyncadd (%p1621_p1), %s1484_s1, 4294967168  ;;  %p22_p5 = scmp.ge.s32.totalorder %s1882_s27, 4   ;;  %s2314_s21 = smov %s1777_s22 }
 0x591   : > { %s2315_s22 = smov %s1781_s23  ;;  %s2316_s23 = smov %s1893_s30 }
 0x592   : > { %s2317_s24 = smov %s1882_s27  ;;  %24 = sbr.rel (!%p22_p5) target bundleno = 6 (0x6), region = 103 }
 0x597   :  { %1489 = vsyncpa [#allocation3], 1 }
 0x598   :  { %1491 = vsyncpa [#allocation3 + $0x1], 1 }

</bundles_post_ra>
